<compile_context>
chip_gen: v6e
topology: v6e:2x2x1
jax: 0.10.0
libtpu: 0.0.40
codegen_flags: <defaults>
</compile_context>

<pallas_src>
import jax
import jax.numpy as jnp
import numpy as np
from jax.experimental import pallas as pl
from jax.experimental.pallas import tpu as pltpu

N_OUT = 1858        # policy logits
BOARD = 64          # 8 * 8 board squares


def _round_up(x, m):
    return (x + m - 1) // m * m


def _pick_tile(total, candidates):
    for c in candidates:
        if total % c == 0:
            return c
    return total


# ----------------------------------------------------------------------------
# Kernel 1: fused 1x1-conv (one matmul over batch*spatial rows) + folded BN bias + ReLU.
# ----------------------------------------------------------------------------
def conv_bn_relu_kernel(x_ref, w_ref, b_ref, h_ref):
    # x_ref: (RA, C_in) bf16   rows = (batch, spatial) of the current batch tile
    # w_ref: (C_in, P)  bf16   conv weight with BN scale folded in
    # b_ref: (1, P)     f32    folded BN bias
    # h_ref: (RA, P)    bf16   activations
    y = jnp.dot(x_ref[...], w_ref[...], preferred_element_type=jnp.float32)
    y = jnp.maximum(y + b_ref[...], 0.0)
    h_ref[...] = y.astype(h_ref.dtype)


def conv_bn_relu(x2, wct, bias_row, batch_tile):
    rows, c_in = x2.shape
    p = wct.shape[1]
    ra = batch_tile * BOARD
    return pl.pallas_call(
        conv_bn_relu_kernel,
        out_shape=jax.ShapeDtypeStruct((rows, p), jnp.bfloat16),
        grid=(rows // ra,),
        in_specs=[
            pl.BlockSpec((ra, c_in), lambda i: (i, 0)),
            pl.BlockSpec((c_in, p), lambda i: (0, 0)),
            pl.BlockSpec((1, p), lambda i: (0, 0)),
        ],
        out_specs=pl.BlockSpec((ra, p), lambda i: (i, 0)),
        compiler_params=pltpu.CompilerParams(
            dimension_semantics=("parallel",),
            # Let the NCHW->rows transpose / pad / bf16 cast fuse into the input DMA
            # instead of a materialized HBM round trip of the full activation.
            allow_input_fusion=[True, False, False],
        ),
    )(x2, wct, bias_row)


# ----------------------------------------------------------------------------
# Kernel 2: final Linear layer — bf16 GEMM, f32 accumulate, (batch, N)-tiled grid.
# The weight streams in (K, n_tile) blocks, so it is never double-buffered whole
# and the pipeline has >= n_pad/n_tile steps even at batch tile count == 1.
# ----------------------------------------------------------------------------
def policy_gemm_kernel(h_ref, w_ref, b_ref, o_ref):
    # h_ref: (BT, K)        bf16  (constant over the N axis -> fetched once per batch tile)
    # w_ref: (K, n_tile)    bf16
    # b_ref: (1, n_tile)    f32
    # o_ref: (BT, n_tile)   f32   lane-dense multiple of 128 -> unmasked stores
    o_ref[...] = (
        jnp.dot(h_ref[...], w_ref[...], preferred_element_type=jnp.float32)
        + b_ref[...]
    )


def policy_gemm(h_flat, wl, bl_row, batch_tile, n_tile):
    b_pad, k = h_flat.shape
    n_pad = wl.shape[1]
    nb = b_pad // batch_tile
    cost = pl.CostEstimate(
        flops=2 * b_pad * k * n_pad,
        transcendentals=0,
        bytes_accessed=(
            b_pad * k * 2            # h (bf16), read once per batch tile
            + nb * k * n_pad * 2     # weight (bf16), re-streamed once per batch tile
            + n_pad * 4              # bias
            + b_pad * n_pad * 4      # output (f32)
        ),
    )
    return pl.pallas_call(
        policy_gemm_kernel,
        out_shape=jax.ShapeDtypeStruct((b_pad, n_pad), jnp.float32),
        grid=(nb, n_pad // n_tile),
        in_specs=[
            pl.BlockSpec((batch_tile, k), lambda i, j: (i, 0)),
            pl.BlockSpec((k, n_tile), lambda i, j: (0, j)),
            pl.BlockSpec((1, n_tile), lambda i, j: (0, j)),
        ],
        out_specs=pl.BlockSpec((batch_tile, n_tile), lambda i, j: (i, j)),
        compiler_params=pltpu.CompilerParams(
            dimension_semantics=("parallel", "parallel"),
            vmem_limit_bytes=32 * 1024 * 1024,
        ),
        cost_estimate=cost,
    )(h_flat, wl, bl_row)


# ----------------------------------------------------------------------------
# One-time parameter preparation (run OUTSIDE the jitted hot path).
# ----------------------------------------------------------------------------
def prepare_params(params, eps=1e-5):
    wc = params["conv_w"][:, :, 0, 0].astype(jnp.float32)               # (P, C_in)
    scale = params["bn_gamma"] / jnp.sqrt(params["bn_var"] + eps)        # (P,)
    bias = params["bn_beta"] - params["bn_mean"] * scale                 # (P,)
    p, _ = wc.shape

    wct = (wc * scale[:, None]).T.astype(jnp.bfloat16)                   # (C_in, P), BN folded
    n_pad = _round_up(N_OUT, 128)                                        # 1920

    # Reorder linear weight rows to the kernel's flatten order k' = s*P + p
    # (stage-1 rows are ordered (batch, spatial) x channels): wl[s*P+p, n] = lin_w[n, p*64+s]
    wl = params["lin_w"].reshape(N_OUT, p, BOARD)                        # (N, P, 64)
    wl = jnp.transpose(wl, (2, 1, 0)).reshape(BOARD * p, N_OUT)          # (K, N)
    wl = jnp.pad(wl, ((0, 0), (0, n_pad - N_OUT))).astype(jnp.bfloat16)  # (K, 1920) bf16

    bl = jnp.pad(params["lin_b"].astype(jnp.float32), (0, n_pad - N_OUT))[None, :]  # (1, 1920)

    return {
        "wct": wct,
        "bias": bias[None, :].astype(jnp.float32),
        "wl": wl,
        "bl": bl,
    }


# ----------------------------------------------------------------------------
# Forward pass (jit this).
# ----------------------------------------------------------------------------
def policy_head_classical(x_nchw, prepped):
    b, c_in, h, w = x_nchw.shape
    assert h == 8 and w == 8, "model assumes an 8x8 board"
    p = prepped["wct"].shape[1]
    k = p * BOARD

    b_pad = _round_up(b, 16)                       # bf16 native (16, 128) tiling
    bt_a = _pick_tile(b_pad, (64, 32, 16))
    bt_b = _pick_tile(b_pad, (256, 128, 64, 32, 16))
    n_pad = prepped["wl"].shape[1]
    n_tile = _pick_tile(n_pad, (384, 256, 128))    # 1920 = 5 * 384 -> 5 pipeline steps

    # NCHW -> rows of (batch, spatial) with channels last, bf16.  With allow_input_fusion
    # on stage 1 this is fused into the kernel's input DMA rather than materialized in HBM.
    x2 = jnp.transpose(x_nchw, (0, 2, 3, 1)).reshape(b, BOARD, c_in)
    if b_pad != b:
        x2 = jnp.pad(x2, ((0, b_pad - b), (0, 0), (0, 0)))
    x2 = x2.reshape(b_pad * BOARD, c_in).astype(jnp.bfloat16)

    h2 = conv_bn_relu(x2, prepped["wct"], prepped["bias"], bt_a)          # (b_pad*64, P) bf16
    h_flat = h2.reshape(b_pad, k)                                         # free bitcast (k = s*P + p)
    out = policy_gemm(h_flat, prepped["wl"], prepped["bl"], bt_b, n_tile)  # (b_pad, 1920) f32
    # TODO(synk): downstream consumers that tolerate padded (b_pad, 1920) logits should skip
    # this slice (it is an extra XLA copy on a bandwidth-bound head) and mask pad rows/cols.
    return out[:b, :N_OUT]


# ----------------------------------------------------------------------------
# Pure-JAX reference (eval-mode BN) for verification.
# ----------------------------------------------------------------------------
def policy_head_reference(x_nchw, params):
    b, c_in, h, w = x_nchw.shape
    wc = params["conv_w"][:, :, 0, 0]
    eps = 1e-5
    scale = params["bn_gamma"] / jnp.sqrt(params["bn_var"] + eps)
    bias = params["bn_beta"] - params["bn_mean"] * scale
    x2 = x_nchw.reshape(b, c_in, h * w)
    y = jnp.einsum("pc,bcs->bps", wc, x2)
    y = y * scale[None, :, None] + bias[None, :, None]
    y = jnp.maximum(y, 0.0)
    y_flat = y.reshape(b, -1)                                  # PyTorch flatten order
    return y_flat @ params["lin_w"].T + params["lin_b"]


if __name__ == "__main__":
    B, C_IN, P = 2, 16, 8        # batch, in_channels, policy_channels
    H = W = 8
    K = P * H * W

    key = jax.random.PRNGKey(0)
    ks = jax.random.split(key, 8)

    params = {
        "conv_w": 0.1 * jax.random.normal(ks[0], (P, C_IN, 1, 1), jnp.float32),
        "bn_gamma": 0.5 + jax.random.uniform(ks[1], (P,), jnp.float32),
        "bn_beta": 0.1 * jax.random.normal(ks[2], (P,), jnp.float32),
        "bn_mean": 0.1 * jax.random.normal(ks[3], (P,), jnp.float32),
        "bn_var": 0.5 + jax.random.uniform(ks[4], (P,), jnp.float32),
        "lin_w": 0.05 * jax.random.normal(ks[5], (N_OUT, K), jnp.float32),
        "lin_b": 0.1 * jax.random.normal(ks[6], (N_OUT,), jnp.float32),
    }

    x = jax.random.normal(ks[7], (B, C_IN, H, W), jnp.float32)   # NCHW, like PyTorch

    prepped = prepare_params(params)                              # one-time, outside jit
    prepped = jax.tree_util.tree_map(jax.block_until_ready, prepped)

    forward = jax.jit(policy_head_classical)
    out = jax.block_until_ready(forward(x, prepped))

    ref = policy_head_reference(x, params)
    assert out.shape == (B, N_OUT), out.shape
    np.testing.assert_allclose(np.asarray(out), np.asarray(ref), rtol=5e-2, atol=5e-2)

    print("KERNEL_OK")
</pallas_src>

<mosaic_0001>
module attributes {stable_mosaic.version = 11 : i64} {
  func.func @conv_bn_relu_kernel(%arg0: i32, %arg1: memref<1024x16xbf16, #tpu.memory_space<vmem>>, %arg2: memref<16x8xbf16, #tpu.memory_space<vmem>>, %arg3: memref<1x8xf32, #tpu.memory_space<vmem>>, %arg4: memref<1024x8xbf16, #tpu.memory_space<vmem>>) attributes {dimension_semantics = [#tpu.dimension_semantics<parallel>], iteration_bounds = array<i64: 1>, scalar_prefetch = 0 : i64, scratch_operands = 0 : i64, tpu.core_type = #tpu.core_type<tc>, window_params = [{transform_indices = @transform_0, window_bounds = array<i64: 1024, 16>}, {pipeline_mode = #tpu.pipeline_mode<synchronous>, transform_indices = @transform_1, window_bounds = array<i64: 16, 8>}, {pipeline_mode = #tpu.pipeline_mode<synchronous>, transform_indices = @transform_2, window_bounds = array<i64: 1, 8>}, {transform_indices = @transform_3, window_bounds = array<i64: 1024, 8>}]} {
    %c0 = arith.constant 0 : index
    %c0_0 = arith.constant 0 : index
    %0 = vector.load %arg1[%c0, %c0_0] : memref<1024x16xbf16, #tpu.memory_space<vmem>>, vector<1024x16xbf16>
    %c0_1 = arith.constant 0 : index
    %c0_2 = arith.constant 0 : index
    %1 = vector.load %arg2[%c0_1, %c0_2] : memref<16x8xbf16, #tpu.memory_space<vmem>>, vector<16x8xbf16>
    %cst = arith.constant dense<0.000000e+00> : vector<1024x8xf32>
    %2 = tpu.matmul %0, %1, %cst {dimension_numbers = #tpu.dot_dimension_numbers<[1], [0], [0], [1], [0, 0, 1, 1], [], []>} : vector<1024x16xbf16>, vector<16x8xbf16>, vector<1024x8xf32> -> vector<1024x8xf32>
    %c0_3 = arith.constant 0 : index
    %c0_4 = arith.constant 0 : index
    %3 = vector.load %arg3[%c0_3, %c0_4] : memref<1x8xf32, #tpu.memory_space<vmem>>, vector<1x8xf32>
    %4 = vector.broadcast %3 : vector<1x8xf32> to vector<1024x8xf32>
    %5 = arith.addf %2, %4 : vector<1024x8xf32>
    %cst_5 = arith.constant 0.000000e+00 : f32
    %6 = vector.broadcast %cst_5 : f32 to vector<1024x8xf32>
    %7 = arith.maximumf %5, %6 : vector<1024x8xf32>
    %8 = arith.truncf %7 : vector<1024x8xf32> to vector<1024x8xbf16>
    %c0_6 = arith.constant 0 : index
    %c0_7 = arith.constant 0 : index
    %9 = vector.load %arg4[%c0_6, %c0_7] : memref<1024x8xbf16, #tpu.memory_space<vmem>>, vector<1024x8xbf16>
    tpu.vector_store %arg4[%c0_6, %c0_7], %8 {strides = array<i32>} : memref<1024x8xbf16, #tpu.memory_space<vmem>>, vector<1024x8xbf16>,
    return
  }
  func.func @transform_0(%arg0: i32) -> (i32, i32) {
    %c0_i32 = arith.constant 0 : i32
    %c0_i32_0 = arith.constant 0 : i32
    return %arg0, %c0_i32 : i32, i32
  }
  func.func @transform_1(%arg0: i32) -> (i32, i32) {
    %c0_i32 = arith.constant 0 : i32
    %c0_i32_0 = arith.constant 0 : i32
    %c0_i32_1 = arith.constant 0 : i32
    return %c0_i32, %c0_i32_0 : i32, i32
  }
  func.func @transform_2(%arg0: i32) -> (i32, i32) {
    %c0_i32 = arith.constant 0 : i32
    %c0_i32_0 = arith.constant 0 : i32
    %c0_i32_1 = arith.constant 0 : i32
    return %c0_i32, %c0_i32_0 : i32, i32
  }
  func.func @transform_3(%arg0: i32) -> (i32, i32) {
    %c0_i32 = arith.constant 0 : i32
    %c0_i32_0 = arith.constant 0 : i32
    return %arg0, %c0_i32 : i32, i32
  }
}

module attributes {stable_mosaic.version = 11 : i64} {
  func.func @policy_gemm_kernel(%arg0: i32, %arg1: i32, %arg2: memref<16x512xbf16, #tpu.memory_space<vmem>>, %arg3: memref<512x384xbf16, #tpu.memory_space<vmem>>, %arg4: memref<1x384xf32, #tpu.memory_space<vmem>>, %arg5: memref<16x384xf32, #tpu.memory_space<vmem>>) attributes {dimension_semantics = [#tpu.dimension_semantics<parallel>, #tpu.dimension_semantics<parallel>], iteration_bounds = array<i64: 1, 5>, scalar_prefetch = 0 : i64, scratch_operands = 0 : i64, tpu.core_type = #tpu.core_type<tc>, window_params = [{transform_indices = @transform_0, window_bounds = array<i64: 16, 512>}, {transform_indices = @transform_1, window_bounds = array<i64: 512, 384>}, {transform_indices = @transform_2, window_bounds = array<i64: 1, 384>}, {transform_indices = @transform_3, window_bounds = array<i64: 16, 384>}]} {
    %c0 = arith.constant 0 : index
    %c0_0 = arith.constant 0 : index
    %0 = vector.load %arg2[%c0, %c0_0] : memref<16x512xbf16, #tpu.memory_space<vmem>>, vector<16x512xbf16>
    %c0_1 = arith.constant 0 : index
    %c0_2 = arith.constant 0 : index
    %1 = vector.load %arg3[%c0_1, %c0_2] : memref<512x384xbf16, #tpu.memory_space<vmem>>, vector<512x384xbf16>
    %cst = arith.constant dense<0.000000e+00> : vector<16x384xf32>
    %2 = tpu.matmul %0, %1, %cst {dimension_numbers = #tpu.dot_dimension_numbers<[1], [0], [0], [1], [0, 0, 1, 1], [], []>} : vector<16x512xbf16>, vector<512x384xbf16>, vector<16x384xf32> -> vector<16x384xf32>
    %c0_3 = arith.constant 0 : index
    %c0_4 = arith.constant 0 : index
    %3 = vector.load %arg4[%c0_3, %c0_4] : memref<1x384xf32, #tpu.memory_space<vmem>>, vector<1x384xf32>
    %4 = vector.broadcast %3 : vector<1x384xf32> to vector<16x384xf32>
    %5 = arith.addf %2, %4 : vector<16x384xf32>
    %c0_5 = arith.constant 0 : index
    %c0_6 = arith.constant 0 : index
    %6 = vector.load %arg5[%c0_5, %c0_6] : memref<16x384xf32, #tpu.memory_space<vmem>>, vector<16x384xf32>
    tpu.vector_store %arg5[%c0_5, %c0_6], %5 {strides = array<i32>} : memref<16x384xf32, #tpu.memory_space<vmem>>, vector<16x384xf32>,
    return
  }
  func.func @transform_0(%arg0: i32, %arg1: i32) -> (i32, i32) {
    %c0_i32 = arith.constant 0 : i32
    %c0_i32_0 = arith.constant 0 : i32
    return %arg0, %c0_i32 : i32, i32
  }
  func.func @transform_1(%arg0: i32, %arg1: i32) -> (i32, i32) {
    %c0_i32 = arith.constant 0 : i32
    %c0_i32_0 = arith.constant 0 : i32
    return %c0_i32, %arg1 : i32, i32
  }
  func.func @transform_2(%arg0: i32, %arg1: i32) -> (i32, i32) {
    %c0_i32 = arith.constant 0 : i32
    %c0_i32_0 = arith.constant 0 : i32
    return %c0_i32, %arg1 : i32, i32
  }
  func.func @transform_3(%arg0: i32, %arg1: i32) -> (i32, i32) {
    %c0_i32 = arith.constant 0 : i32
    return %arg0, %arg1 : i32, i32
  }
}

</mosaic_0001>

<bundles_post_ra>
// kernel: policy_head_classical.3
= control target key start
LH: loop header
LB: loop body
LE: loop exit
PB: predicated region body
PF: predicated region fallthrough
CT: control target
= control target key end

     0   :  { %8 = vsyncpa [#allocation3], 0  ;;  %s2043_s0 = inlined_call_operand.vmem [shape: bf16[16,512], index: 0, kind: input, shape index: {}]   ;;  %s2044_s1 = inlined_call_operand.hbm [shape: bf16[512,1920], index: 1, kind: input, shape index: {}]   ;;  %s2045_s2 = inlined_call_operand.hbm [shape: f32[1,1920], index: 2, kind: input, shape index: {}]   ;;  %s2046_s3 = inlined_call_operand.vmem [shape: f32[16,1920], index: 3, kind: output, shape index: {}]  }
   0x1   :  { %10 = vsyncpa [#allocation3 + $0x1], 0 }
   0x2   :  { %11 = vsyncpa [#allocation5], 0 }
   0x3   :  { %13 = vsyncpa [#allocation5 + $0x1], 0  ;;  %s1770_s12 = smov 0   ;;  %s1772_s13 = smov 0  }
   0x4   :  { %s1774_s14 = smov 0   ;;  %s1776_s15 = smov 0  }
   0x5   :  { %s1778_s16 = smov 0   ;;  %s1780_s17 = smov 0  }
   0x6 LB: > { %s1273_s18 = sadd.s32 4294967295, %s1743_s17   ;;  %s28_s19 = sadd.s32 1, %s1739_s16  ;;  %s1743_s17 = sphi %s1780_s17, %s19_s17   ;;  %s1739_s16 = sphi %s1778_s16, %s2056_s16   ;;  %s1735_s15 = sphi %s1776_s15, %s2055_s15   ;;  %s1731_s14 = sphi %s1774_s14, %s2054_s14   ;;  %s1727_s13 = sphi %s1772_s13, %s2053_s13   ;;  %s1723_s12 = sphi %s1770_s12, %s2052_s12  }
   0x7   : > { %p29_p0 = scmp.ge.s32.totalorder %s28_s19, 5  ;;  %s64_s20 = sadd.s32 1, %s1731_s14 }
   0x8   : > { %p71_p1 = scmp.ne.s32.totalorder %s1731_s14, %s1727_s13  ;;  %p72_p2 = scmp.eq.s32.totalorder %s1743_s17, 0 }
   0x9   : > { %s2058_s19 = smov (%p29_p0, %s28_s19), 0  ;;  %p77_p4 = scmp.ne.s32.totalorder %s1727_s13, %s1723_s12 }
   0xa   : > { %p1806_p3 = por %p72_p2, %p71_p1  ;;  %s61_s22 = ssub.s32 %s1739_s16, %s2058_s19 }
   0xb   : > { %p78_p5 = scmp.eq.s32.totalorder %s1273_s18, 0  ;;  %p62_p6 = scmp.eq.s32.totalorder %s61_s22, 0 }
   0xc   : > { %p129_p7 = scmp.eq.s32.totalorder %s1273_s18, 4  ;;  %p1447_p10 = scmp.lt.s32.totalorder %s1743_s17, 5 }
   0xd   : > { %p1813_p8 = por %p78_p5, %p77_p4  ;;  %s1826_s26 = sand.u32 1, %s1731_s14  }
   0xe   : > { %s1818_s24 = scalar_select %p62_p6, %s1731_s14, %s64_s20  }
   0xf   : > { %p1820_p9 = por %p129_p7, %p71_p1  ;;  %s1384_s27 = smul.u32 192, %s1739_s16 }
  0x10   : > { %s1431_s28 = smul.u32 768, %s1826_s26  ;;  %p1835_p11 = pnand %p1447_p10, %p1806_p3 }
  0x11   : > { %s175_s4 = scalar_lea.hbm %s2044_s1, %s1384_s27  ;;  %p1280_p12 = scmp.ge.s32.totalorder %s1743_s17, 1 }
  0x12   : > { %s169_s6 = scalar_lea.vmem [#allocation2], %s1431_s28  ;;  %s166_s8 = scalar_lea.sflag [#allocation3], %s1826_s26 }
  0x13   : > { %s176_s7 = sshll.u32 %s169_s6, 4  ;;  %p1635_p13 = pneg %p1835_p11  ;;  %s177_s7 = int_to_ptr.vmem [resolvable:$true] %s176_s7 }
  0x14   : > { %s1646_s9 = scalar_lea.vmem %s177_s7, 12288  ;;  %s1745_s10 = smov [#allocation2]  }
  0x15   : > { %p1647_p0 = scmp.ne.s32.totalorder %s177_s7, %s1646_s9  ;;  %s1651_s11 = sshll.u32 %s1745_s10, 4  ;;  %s1652_s11 = int_to_ptr.vmem [resolvable:$false] %s1651_s11 }
  0x16   : > { %s1653_s12 = scalar_lea.vmem %s1652_s11, 24576  ;;  %p1654_p3 = scmp.lt.s32.totalorder %s177_s7, %s1652_s11 }
  0x17   : > { %p1649_p1 = pnand %p1647_p0, %p1635_p13  ;;  %p1655_p4 = scmp.lt.s32.totalorder %s1653_s12, %s1646_s9 }
  0x19   : > { %p1650_p2 = pneg %p1649_p1  ;;  %p1656_p5 = por %p1655_p4, %p1654_p3 }
  0x1b   : > { %p1657_p6 = pnand %p1656_p5, %p1650_p2 }
  0x1d   : > { %1660 = shalt.err (!%p1657_p6)
}
  0x1e   : > { %s1746_s18 = smov 960   ;;  %s1747_s20 = smov 192  }
  0x1f   : > { %s1748_s21 = smov 12   ;;  %p203_p7 = scmp.lt.s32.totalorder %s1743_s17, 6 }
  0x20   : > { %1443 = dma.hbm_to_vmem [thread:$0]  (!%p1835_p11), %s175_s4, 12288, %s177_s7, %s166_s8, %s1746_s18, %s1747_s20, %s1748_s21  }
  0x21   : > { %s1432_s22 = smul.u32 3, %s1826_s26  ;;  %p1852_p10 = pnand %p1280_p12, %p203_p7 }
  0x22   : > { %s1385_s28 = smul.u32 48, %s1739_s16  ;;  %s187_s11 = scalar_lea.sflag [#allocation5], %s1826_s26 }
  0x23   : > { %s190_s9 = scalar_lea.vmem [#allocation4], %s1432_s22  ;;  %s1749_s4 = smov [#allocation4]  }
  0x24   : > { %s196_s6 = scalar_lea.hbm %s2045_s2, %s1385_s28  ;;  %s198_s10 = sshll.u32 %s190_s9, 4  ;;  %s199_s10 = int_to_ptr.vmem [resolvable:$true] %s198_s10 }
  0x25   : > { %s1674_s12 = scalar_lea.vmem %s199_s10, 48  ;;  %s1679_s7 = sshll.u32 %s1749_s4, 4  ;;  %s1680_s7 = int_to_ptr.vmem [resolvable:$false] %s1679_s7 }
  0x26   : > { %p1675_p0 = scmp.ne.s32.totalorder %s199_s10, %s1674_s12  ;;  %s1681_s8 = scalar_lea.vmem %s1680_s7, 96 }
  0x27   : > { %p1682_p12 = scmp.lt.s32.totalorder %s199_s10, %s1680_s7  ;;  %p1683_p3 = scmp.lt.s32.totalorder %s1681_s8, %s1674_s12 }
  0x28   : > { %p1677_p1 = pnand %p1675_p0, %p1635_p13 }
  0x29   : > { %p1684_p4 = por %p1683_p3, %p1682_p12 }
  0x2a   : > { %p1678_p2 = pneg %p1677_p1 }
  0x2c   : > { %p1685_p5 = pnand %p1684_p4, %p1678_p2 }
  0x2e   : > { %1688 = shalt.err (!%p1685_p5)
}
  0x2f   : > { %1446 = dma.hbm_to_vmem [thread:$0]  (!%p1835_p11), %s196_s6, 48, %s199_s10, %s187_s11  }
  0x30   : > { %207 = sbr.rel (%p1852_p10) target bundleno = 369 (0x171), region = 32  ;;  %s1869_s26 = sand.u32 (!%p1852_p10), 1, %s1727_s13  }
  0x31   : > { %s1433_s18 = smul.u32 (!%p1852_p10), 768, %s1869_s26  ;;  %s210_s20 = scalar_lea.sflag (!%p1852_p10), [#allocation3], %s1869_s26 }
  0x33   : > { %s1873_s21 = scalar_lea.vmem (!%p1852_p10), [#allocation2], %s1433_s18 }
  0x35   : > { %1714 = dma.done.wait (%p1813_p8), %s210_s20, 12288  }
  0x36   : > { %1716 = vsyncadd (%p1813_p8), %s210_s20, 4294955008  ;;  %s1434_s5 = smul.u32 3, %s1869_s26  ;;  %s219_s22 = scalar_lea.sflag [#allocation5], %s1869_s26 }
  0x38   : > { %s1881_s27 = scalar_lea.vmem [#allocation4], %s1434_s5 }
  0x39   : > { %1718 = dma.done.wait (%p1813_p8), %s219_s22, 48  }
  0x3a   : > { %1720 = vsyncadd (%p1813_p8), %s219_s22, 4294967248  ;;  %v1499_v0 = vld [vmem:[%s1873_s21 + $0xac] ss:$12 sps:$4 sm:$0xff]   ;;  %v1503_v2 = vld [vmem:[%s1873_s21 + $0xa8] ss:$12 sps:$4 sm:$0xff]   ;;  %s1435_s12 = smul.u32 48, %s1869_s26 }
  0x3b   : > { %v1501_v1 = vld [vmem:[%s1873_s21 + $0x22c] ss:$12 sps:$4 sm:$0xff]   ;;  %948 = vmatprep.subr.bf16.mxu0 %v1499_v0  ;;  %v1504_v3 = vld [vmem:[%s1873_s21 + $0x228] ss:$12 sps:$4 sm:$0xff]   ;;  %v1509_v6 = vld [vmem:[%s1873_s21 + $0x90] ss:$12 sps:$4 sm:$0xff]  }
  0x3c   : > { %991 = vmatprep.subr.bf16.mxu1 %v1501_v1  ;;  %v1505_v4 = vld [vmem:[%s1873_s21 + $0x94] ss:$12 sps:$4 sm:$0xff]   ;;  %949 = vmatpush1.bf16.msra.mxu0 %v1503_v2  ;;  %v1510_v7 = vld [vmem:[%s1873_s21 + $0x210] ss:$12 sps:$4 sm:$0xff]   ;;  %v1515_v10 = vld [vmem:[%s1873_s21 + $0x78] ss:$12 sps:$4 sm:$0xff]  }
  0x3d   : > { %992 = vmatpush1.bf16.msra.mxu1 %v1504_v3  ;;  %v1507_v5 = vld [vmem:[%s1873_s21 + $0x214] ss:$12 sps:$4 sm:$0xff]   ;;  %950 = vmatprep.subr.bf16.mxu0 %v1505_v4  ;;  %v1511_v8 = vld [vmem:[%s1873_s21 + $0x7c] ss:$12 sps:$4 sm:$0xff]   ;;  %v1516_v11 = vld [vmem:[%s1873_s21 + $0x1f8] ss:$12 sps:$4 sm:$0xff]  }
  0x3e   : > { %993 = vmatprep.subr.bf16.mxu1 %v1507_v5  ;;  %v1513_v9 = vld [vmem:[%s1873_s21 + $0x1fc] ss:$12 sps:$4 sm:$0xff]   ;;  %v1517_v12 = vld [vmem:[%s1873_s21 + $0x64] ss:$12 sps:$4 sm:$0xff]   ;;  %v1521_v14 = vld [vmem:[%s1873_s21 + $0x60] ss:$12 sps:$4 sm:$0xff]  }
  0x3f   : > { %v1519_v13 = vld [vmem:[%s1873_s21 + $0x1e4] ss:$12 sps:$4 sm:$0xff]   ;;  %v1522_v15 = vld [vmem:[%s1873_s21 + $0x1e0] ss:$12 sps:$4 sm:$0xff]   ;;  %v1527_v18 = vld [vmem:[%s1873_s21 + $0x48] ss:$12 sps:$4 sm:$0xff]  }
  0x40   : > { %951 = vmatpush1.bf16.msra.mxu0 %v1509_v6  ;;  %v1523_v16 = vld [vmem:[%s1873_s21 + $0x4c] ss:$12 sps:$4 sm:$0xff]   ;;  %v1528_v19 = vld [vmem:[%s1873_s21 + $0x1c8] ss:$12 sps:$4 sm:$0xff]   ;;  %v1533_v22 = vld [vmem:[%s1873_s21 + $0x30] ss:$12 sps:$4 sm:$0xff]  }
  0x41   : > { %994 = vmatpush1.bf16.msra.mxu1 %v1510_v7  ;;  %952 = vmatprep.subr.bf16.mxu0 %v1511_v8  ;;  %v1525_v17 = vld [vmem:[%s1873_s21 + $0x1cc] ss:$12 sps:$4 sm:$0xff]   ;;  %v1529_v20 = vld [vmem:[%s1873_s21 + $0x34] ss:$12 sps:$4 sm:$0xff]   ;;  %v1534_v23 = vld [vmem:[%s1873_s21 + $0x1b0] ss:$12 sps:$4 sm:$0xff]  }
  0x42   : > { %995 = vmatprep.subr.bf16.mxu1 %v1513_v9  ;;  %v1531_v21 = vld [vmem:[%s1873_s21 + $0x1b4] ss:$12 sps:$4 sm:$0xff]   ;;  %v1535_v24 = vld [vmem:[%s1873_s21 + $0x1c] ss:$12 sps:$4 sm:$0xff]   ;;  %v1539_v26 = vld [vmem:[%s1873_s21 + $0x18] ss:$12 sps:$4 sm:$0xff]  }
  0x43   : > { %v1537_v25 = vld [vmem:[%s1873_s21 + $0x19c] ss:$12 sps:$4 sm:$0xff]   ;;  %v1540_v27 = vld [vmem:[%s1873_s21 + $0x198] ss:$12 sps:$4 sm:$0xff]   ;;  %v1545_v30 = vld [vmem:[%s1873_s21] ss:$12 sps:$4 sm:$0xff]  }
  0x44   : > { %953 = vmatpush1.bf16.msra.mxu0 %v1515_v10  ;;  %v1541_v28 = vld [vmem:[%s1873_s21 + $0x4] ss:$12 sps:$4 sm:$0xff]   ;;  %v1546_v31 = vld [vmem:[%s1873_s21 + $0x180] ss:$12 sps:$4 sm:$0xff]   ;;  %v1551_v34 = vld [vmem:[%s1873_s21 + $0x168] ss:$12 sps:$4 sm:$0xff]  }
  0x45   : > { %996 = vmatpush1.bf16.msra.mxu1 %v1516_v11  ;;  %954 = vmatprep.subr.bf16.mxu0 %v1517_v12  ;;  %v1543_v29 = vld [vmem:[%s1873_s21 + $0x184] ss:$12 sps:$4 sm:$0xff]   ;;  %v1547_v32 = vld [vmem:[%s1873_s21 + $0x16c] ss:$12 sps:$4 sm:$0xff]   ;;  %v1552_v35 = vld [vmem:[%s1873_s21 + $0x2e8] ss:$12 sps:$4 sm:$0xff]  }
  0x46   : > { %997 = vmatprep.subr.bf16.mxu1 %v1519_v13  ;;  %v1549_v33 = vld [vmem:[%s1873_s21 + $0x2ec] ss:$12 sps:$4 sm:$0xff]   ;;  %v1553_v36 = vld [vmem:[%s1873_s21 + $0x154] ss:$12 sps:$4 sm:$0xff]   ;;  %v1557_v38 = vld [vmem:[%s1873_s21 + $0x150] ss:$12 sps:$4 sm:$0xff]  }
  0x47   : > { %v1555_v37 = vld [vmem:[%s1873_s21 + $0x2d4] ss:$12 sps:$4 sm:$0xff]   ;;  %v1558_v39 = vld [vmem:[%s1873_s21 + $0x2d0] ss:$12 sps:$4 sm:$0xff]   ;;  %v1563_v42 = vld [vmem:[%s1873_s21 + $0x138] ss:$12 sps:$4 sm:$0xff]  }
  0x48   : > { %955 = vmatpush1.bf16.msra.mxu0 %v1521_v14  ;;  %v1559_v40 = vld [vmem:[%s1873_s21 + $0x13c] ss:$12 sps:$4 sm:$0xff]   ;;  %v1564_v43 = vld [vmem:[%s1873_s21 + $0x2b8] ss:$12 sps:$4 sm:$0xff]   ;;  %v1569_v46 = vld [vmem:[%s1873_s21 + $0x120] ss:$12 sps:$4 sm:$0xff]  }
  0x49   : > { %998 = vmatpush1.bf16.msra.mxu1 %v1522_v15  ;;  %956 = vmatprep.subr.bf16.mxu0 %v1523_v16  ;;  %v1561_v41 = vld [vmem:[%s1873_s21 + $0x2bc] ss:$12 sps:$4 sm:$0xff]   ;;  %v1565_v44 = vld [vmem:[%s1873_s21 + $0x124] ss:$12 sps:$4 sm:$0xff]   ;;  %v1570_v47 = vld [vmem:[%s1873_s21 + $0x2a0] ss:$12 sps:$4 sm:$0xff]  }
  0x4a   : > { %999 = vmatprep.subr.bf16.mxu1 %v1525_v17  ;;  %v1567_v45 = vld [vmem:[%s1873_s21 + $0x2a4] ss:$12 sps:$4 sm:$0xff]   ;;  %v1571_v48 = vld [vmem:[%s1873_s21 + $0x10c] ss:$12 sps:$4 sm:$0xff]   ;;  %v1575_v52 = vld [vmem:[%s1873_s21 + $0x108] ss:$12 sps:$4 sm:$0xff]  }
  0x4b   : > { %v1597_v49 = vld [vmem:[%s2043_s0 + $0x4] ss:$16 sps:$4 sm:$0xff]   ;;  %v1573_v50 = vld [vmem:[%s1873_s21 + $0x28c] ss:$12 sps:$4 sm:$0xff]   ;;  %v1581_v56 = vld [vmem:[%s1873_s21 + $0xf0] ss:$12 sps:$4 sm:$0xff]  }
  0x4c   : > { %957 = vmatpush1.bf16.msra.mxu0 %v1527_v18  ;;  %v1600_v51 = vld [vmem:[%s2043_s0 + $0xc] ss:$16 sps:$4 sm:$0xff]   ;;  %980 = vmatprep.mubr.bf16.mxu0 %v1597_v49  ;;  %v1576_v53 = vld [vmem:[%s1873_s21 + $0x288] ss:$12 sps:$4 sm:$0xff]   ;;  %v1587_v60 = vld [vmem:[%s1873_s21 + $0xd8] ss:$12 sps:$4 sm:$0xff]  }
  0x4d   : > { %1000 = vmatpush1.bf16.msra.mxu1 %v1528_v19  ;;  %958 = vmatprep.subr.bf16.mxu0 %v1529_v20  ;;  %v1577_v54 = vld [vmem:[%s1873_s21 + $0xf4] ss:$12 sps:$4 sm:$0xff]   ;;  %v1582_v57 = vld [vmem:[%s1873_s21 + $0x270] ss:$12 sps:$4 sm:$0xff]   ;;  %v1588_v61 = vld [vmem:[%s1873_s21 + $0x258] ss:$12 sps:$4 sm:$0xff]  }
  0x4e   : > { %1001 = vmatprep.subr.bf16.mxu1 %v1531_v21  ;;  %1023 = vmatprep.mubr.bf16.mxu1 %v1600_v51  ;;  %v1579_v55 = vld [vmem:[%s1873_s21 + $0x274] ss:$12 sps:$4 sm:$0xff]   ;;  %v1583_v58 = vld [vmem:[%s1873_s21 + $0xdc] ss:$12 sps:$4 sm:$0xff]   ;;  %v1589_v62 = vld [vmem:[%s1873_s21 + $0xc4] ss:$12 sps:$4 sm:$0xff]  }
  0x4f   : > { %v1585_v59 = vld [vmem:[%s1873_s21 + $0x25c] ss:$12 sps:$4 sm:$0xff]   ;;  %v1591_v63 = vld [vmem:[%s1873_s21 + $0x244] ss:$12 sps:$4 sm:$0xff]   ;;  %v1593_v0 = vld [vmem:[%s1873_s21 + $0xc0] ss:$12 sps:$4 sm:$0xff]  }
  0x50   : > { %959 = vmatpush1.bf16.msra.mxu0 %v1533_v22  ;;  %v1594_v1 = vld [vmem:[%s1873_s21 + $0x240] ss:$12 sps:$4 sm:$0xff]   ;;  %v1601_v2 = vld [vmem:[%s1873_s21 + $0x170] ss:$12 sps:$4 sm:$0xff]   ;;  %v1966_v4 = vld [vmem:[%s2043_s0 + $0x8] ss:$16 sps:$4 sm:$0xff]  }
  0x51   : > { %1002 = vmatpush1.bf16.msra.mxu1 %v1534_v23  ;;  %960 = vmatprep.subr.bf16.mxu0 %v1535_v24  ;;  %v1961_v3 = vld [vmem:[%s2043_s0] ss:$16 sps:$4 sm:$0xff]   ;;  %v1605_v8 = vld [vmem:[%s1873_s21 + $0x158] ss:$12 sps:$4 sm:$0xff]   ;;  %v1613_v16 = vld [vmem:[%s1873_s21 + $0x128] ss:$12 sps:$4 sm:$0xff]  }
  0x52   : > { %1003 = vmatprep.subr.bf16.mxu1 %v1537_v25  ;;  %v1602_v5 = vld [vmem:[%s1873_s21 + $0x2f0] ss:$12 sps:$4 sm:$0xff]   ;;  %v1606_v9 = vld [vmem:[%s1873_s21 + $0x2d8] ss:$12 sps:$4 sm:$0xff]   ;;  %v1609_v12 = vld [vmem:[%s1873_s21 + $0x140] ss:$12 sps:$4 sm:$0xff]  }
  0x53   : > { %v1603_v6 = vld [vmem:[%s1873_s21 + $0xb0] ss:$12 sps:$4 sm:$0xff]   ;;  %v1607_v10 = vld [vmem:[%s1873_s21 + $0x98] ss:$12 sps:$4 sm:$0xff]   ;;  %v1610_v13 = vld [vmem:[%s1873_s21 + $0x2c0] ss:$12 sps:$4 sm:$0xff]  }
  0x54   : > { %961 = vmatpush1.bf16.msra.mxu0 %v1539_v26  ;;  %v1604_v7 = vld [vmem:[%s1873_s21 + $0x230] ss:$12 sps:$4 sm:$0xff]   ;;  %v1608_v11 = vld [vmem:[%s1873_s21 + $0x218] ss:$12 sps:$4 sm:$0xff]   ;;  %v1611_v14 = vld [vmem:[%s1873_s21 + $0x80] ss:$12 sps:$4 sm:$0xff]  }
  0x55   : > { %1004 = vmatpush1.bf16.msra.mxu1 %v1540_v27  ;;  %962 = vmatprep.subr.bf16.mxu0 %v1541_v28  ;;  %v1612_v15 = vld [vmem:[%s1873_s21 + $0x200] ss:$12 sps:$4 sm:$0xff]   ;;  %v1614_v17 = vld [vmem:[%s1873_s21 + $0x2a8] ss:$12 sps:$4 sm:$0xff]   ;;  %v1617_v20 = vld [vmem:[%s1873_s21 + $0x110] ss:$12 sps:$4 sm:$0xff]  }
  0x56   : > { %1005 = vmatprep.subr.bf16.mxu1 %v1543_v29  ;;  %v1615_v18 = vld [vmem:[%s1873_s21 + $0x68] ss:$12 sps:$4 sm:$0xff]   ;;  %v1618_v21 = vld [vmem:[%s1873_s21 + $0x290] ss:$12 sps:$4 sm:$0xff]   ;;  %v1621_v24 = vld [vmem:[%s1873_s21 + $0xf8] ss:$12 sps:$4 sm:$0xff]  }
  0x57   : > { %v1616_v19 = vld [vmem:[%s1873_s21 + $0x1e8] ss:$12 sps:$4 sm:$0xff]   ;;  %v1619_v22 = vld [vmem:[%s1873_s21 + $0x50] ss:$12 sps:$4 sm:$0xff]   ;;  %v1622_v25 = vld [vmem:[%s1873_s21 + $0x278] ss:$12 sps:$4 sm:$0xff]  }
  0x58   : > { %963 = vmatpush1.bf16.msra.mxu0 %v1545_v30  ;;  %v1620_v23 = vld [vmem:[%s1873_s21 + $0x1d0] ss:$12 sps:$4 sm:$0xff]   ;;  %v1623_v26 = vld [vmem:[%s1873_s21 + $0x38] ss:$12 sps:$4 sm:$0xff]   ;;  %v1625_v28 = vld [vmem:[%s1873_s21 + $0xe0] ss:$12 sps:$4 sm:$0xff]  }
  0x59   : > { %1006 = vmatpush1.bf16.msra.mxu1 %v1546_v31  ;;  %964 = vmatprep.subr.bf16.mxu0 %v1547_v32  ;;  %v1624_v27 = vld [vmem:[%s1873_s21 + $0x1b8] ss:$12 sps:$4 sm:$0xff]   ;;  %v1626_v29 = vld [vmem:[%s1873_s21 + $0x260] ss:$12 sps:$4 sm:$0xff]   ;;  %v1629_v32 = vld [vmem:[%s1873_s21 + $0xc8] ss:$12 sps:$4 sm:$0xff]  }
  0x5a   : > { %1007 = vmatprep.subr.bf16.mxu1 %v1549_v33  ;;  %v1627_v30 = vld [vmem:[%s1873_s21 + $0x20] ss:$12 sps:$4 sm:$0xff]   ;;  %v1630_v33 = vld [vmem:[%s1873_s21 + $0x248] ss:$12 sps:$4 sm:$0xff]   ;;  %s2005_s4 = scalar_lea.vmem [#allocation6], %s1435_s12  ;;  %s1386_s7 = smul.u32 (%p1820_p9), 24, %s1735_s15 }
  0x5b   : > { %v1628_v31 = vld [vmem:[%s1873_s21 + $0x1a0] ss:$12 sps:$4 sm:$0xff]  }
  0x5c   : > { %965 = vmatpush2.bf16.msra.mxu0 %v1551_v34  ;;  %v1631_v34 = vld [vmem:[%s1873_s21 + $0x8] ss:$12 sps:$4 sm:$0xff]   ;;  %s1134_s18 = scalar_lea.vmem (%p1820_p9), %s2046_s3, %s1386_s7 }
  0x5d   : > { %1008 = vmatpush2.bf16.msra.mxu1 %v1552_v35  ;;  %966 = vmatprep.subr.bf16.mxu0 %v1553_v36  ;;  %v1632_v35 = vld [vmem:[%s1873_s21 + $0x188] ss:$12 sps:$4 sm:$0xff]   ;;  %v401_v36 = vlaneseq }
  0x5e   : > { %1009 = vmatprep.subr.bf16.mxu1 %v1555_v37 }
  0x5f   : > { %v402_v37 = vshrl.u32 %v401_v36, 7 }
  0x60   : > { %967 = vmatpush2.bf16.msra.mxu0 %v1557_v38 }
  0x61   : > { %1010 = vmatpush2.bf16.msra.mxu1 %v1558_v39  ;;  %968 = vmatprep.subr.bf16.mxu0 %v1559_v40  ;;  %v403_v38 = vsub.s32 0, %v402_v37  ;;  %v399_v39 = vld [vmem:[%s1881_s27] sm:$0x7]  ;;  %v407_v40 = vsub.s32 1, %v402_v37 }
  0x62   : > { %1011 = vmatprep.subr.bf16.mxu1 %v1561_v41 }
  0x63   : > { %v404_v41 = vrot.slane %v399_v39, %v403_v38 }
  0x64   : > { %969 = vmatpush2.bf16.msra.mxu0 %v1563_v42  ;;  %v408_v42 = vrot.slane %v399_v39, %v407_v40 }
  0x65   : > { %1012 = vmatpush2.bf16.msra.mxu1 %v1564_v43  ;;  %970 = vmatprep.subr.bf16.mxu0 %v1565_v44 }
  0x66   : > { %1013 = vmatprep.subr.bf16.mxu1 %v1567_v45 }
  0x68   : > { %971 = vmatpush2.bf16.msra.mxu0 %v1569_v46 }
  0x69   : > { %1014 = vmatpush2.bf16.msra.mxu1 %v1570_v47  ;;  %972 = vmatprep.subr.bf16.mxu0 %v1571_v48 }
  0x6a   : > { %1015 = vmatprep.subr.bf16.mxu1 %v1573_v50 }
  0x6c   : > { %973 = vmatpush2.bf16.msra.mxu0 %v1575_v52 }
  0x6d   : > { %1016 = vmatpush2.bf16.msra.mxu1 %v1576_v53  ;;  %974 = vmatprep.subr.bf16.mxu0 %v1577_v54 }
  0x6e   : > { %1017 = vmatprep.subr.bf16.mxu1 %v1579_v55 }
  0x70   : > { %975 = vmatpush2.bf16.msra.mxu0 %v1581_v56 }
  0x71   : > { %1018 = vmatpush2.bf16.msra.mxu1 %v1582_v57  ;;  %976 = vmatprep.subr.bf16.mxu0 %v1583_v58 }
  0x72   : > { %1019 = vmatprep.subr.bf16.mxu1 %v1585_v59  ;;  %v411_v59 = vsub.s32 2, %v402_v37 }
  0x74   : > { %977 = vmatpush2.bf16.msra.mxu0 %v1587_v60 }
  0x75   : > { %1020 = vmatpush2.bf16.msra.mxu1 %v1588_v61  ;;  %978 = vmatprep.subr.bf16.mxu0 %v1589_v62  ;;  %v412_v62 = vrot.slane %v399_v39, %v411_v59 }
  0x76   : > { %1021 = vmatprep.subr.bf16.mxu1 %v1591_v63 }
  0x78   : > { %979 = vmatpush2.bf16.msra.mxu0 %v1593_v0 }
  0x79   : > { %1022 = vmatpush2.bf16.msra.mxu1 %v1594_v1  ;;  %1387 = vmatprep.subr.bf16.mxu0 %v1601_v2 }
  0x7a   : > { %1409 = vmatprep.subr.bf16.mxu1 %v1602_v5 }
  0x7b   : > { %981 = vmatmul.mubr.bf16.vlgmr.msra.gmra.mxu0 %v1961_v3 }
  0x7c   : > { %1024 = vmatmul.mubr.bf16.vlgmr.msra.gmra.mxu1 %v1966_v4  ;;  %1388 = vmatpush3.bf16.msra.mxu0 %v1603_v6 }
  0x7d   : > { %1410 = vmatpush3.bf16.msra.mxu1 %v1604_v7  ;;  %1389 = vmatprep.subr.bf16.mxu0 %v1605_v8 }
  0x7e   : > { %1411 = vmatprep.subr.bf16.mxu1 %v1606_v9  ;;  %1066 = vmatprep.mubr.bf16.mxu0 %v1597_v49 }
  0x7f   : > { %1107 = vmatprep.mubr.bf16.mxu1 %v1600_v51 }
  0x80   : > { %1390 = vmatpush3.bf16.msra.mxu0 %v1607_v10 }
  0x81   : > { %1412 = vmatpush3.bf16.msra.mxu1 %v1608_v11  ;;  %1391 = vmatprep.subr.bf16.mxu0 %v1609_v12 }
  0x82   : > { %1413 = vmatprep.subr.bf16.mxu1 %v1610_v13 }
  0x84   : > { %1392 = vmatpush3.bf16.msra.mxu0 %v1611_v14 }
  0x85   : > { %1414 = vmatpush3.bf16.msra.mxu1 %v1612_v15  ;;  %1393 = vmatprep.subr.bf16.mxu0 %v1613_v16 }
  0x86   : > { %1415 = vmatprep.subr.bf16.mxu1 %v1614_v17 }
  0x88   : > { %1394 = vmatpush3.bf16.msra.mxu0 %v1615_v18 }
  0x89   : > { %1416 = vmatpush3.bf16.msra.mxu1 %v1616_v19  ;;  %1395 = vmatprep.subr.bf16.mxu0 %v1617_v20 }
  0x8a   : > { %1417 = vmatprep.subr.bf16.mxu1 %v1618_v21 }
  0x8c   : > { %1396 = vmatpush3.bf16.msra.mxu0 %v1619_v22 }
  0x8d   : > { %1418 = vmatpush3.bf16.msra.mxu1 %v1620_v23  ;;  %1397 = vmatprep.subr.bf16.mxu0 %v1621_v24 }
  0x8e   : > { %1419 = vmatprep.subr.bf16.mxu1 %v1622_v25 }
  0x90   : > { %1398 = vmatpush3.bf16.msra.mxu0 %v1623_v26 }
  0x91   : > { %1420 = vmatpush3.bf16.msra.mxu1 %v1624_v27  ;;  %1399 = vmatprep.subr.bf16.mxu0 %v1625_v28 }
  0x92   : > { %1421 = vmatprep.subr.bf16.mxu1 %v1626_v29 }
  0x94   : > { %1400 = vmatpush3.bf16.msra.mxu0 %v1627_v30 }
  0x95   : > { %1422 = vmatpush3.bf16.msra.mxu1 %v1628_v31  ;;  %1401 = vmatprep.subr.bf16.mxu0 %v1629_v32 }
  0x96   : > { %1423 = vmatprep.subr.bf16.mxu1 %v1630_v33 }
  0x98   : > { %1402 = vmatpush3.bf16.msra.mxu0 %v1631_v34 }
  0x99   : > { %1424 = vmatpush3.bf16.msra.mxu1 %v1632_v35 }
  0x9b   : > { %1067 = vmatmul.mubr.bf16.vlgmr.msra.gmra.mxu0 %v1961_v3 }
  0x9c   : > { %1108 = vmatmul.mubr.bf16.vlgmr.msra.gmra.mxu1 %v1966_v4 }
 0x13b   : > { %v982_v43 = vpop.f32.mrf.mxu0 }
 0x13c   : > { %v1025_v44 = vpop.f32.mrf.mxu1  ;;  %v983_v45 = vadd.f32 %v982_v43, %v404_v41 }
 0x13d   : > { %v984_v46 = vpop.f32.mrf.mxu0 }
 0x13e   : > { %v1027_v47 = vpop.f32.mrf.mxu1  ;;  %v1026_v48 = vadd.f32 %v1025_v44, %v983_v45  ;;  %v985_v49 = vadd.f32 %v984_v46, %v408_v42 }
 0x13f   : > { %v986_v50 = vpop.f32.mrf.mxu0 }
 0x140   : > { %v1029_v51 = vpop.f32.mrf.mxu1  ;;  %1116 = vst [vmem:[%s2005_s4] sm:$0xff] %v1026_v48  ;;  %v1028_v52 = vadd.f32 %v1027_v47, %v985_v49  ;;  %v987_v53 = vadd.f32 %v986_v50, %v404_v41 }
 0x141   : > { %v988_v54 = vpop.f32.mrf.mxu0 }
 0x142   : > { %1117 = vst [vmem:[%s2005_s4 + $0x8] sm:$0xff] %v1028_v52  ;;  %v1030_v55 = vadd.f32 %v1029_v51, %v987_v53  ;;  %v989_v56 = vadd.f32 %v988_v54, %v408_v42  ;;  %v1031_v57 = vpop.f32.mrf.mxu1 }
 0x144   : > { %1119 = vst [vmem:[%s2005_s4 + $0x18] sm:$0xff] %v1030_v55  ;;  %v1032_v58 = vadd.f32 %v1031_v57, %v989_v56 }
 0x146   : > { %1120 = vst [vmem:[%s2005_s4 + $0x20] sm:$0xff] %v1032_v58 }
 0x147   : > { %v1147_v13 = vld [vmem:[%s2005_s4] sm:$0xff] (%p1820_p9) }
 0x148   : > { %1148 = vst [vmem:[%s1134_s18] sm:$0xff] (%p1820_p9), %v1147_v13 }
 0x149   : > { %v1149_v14 = vld [vmem:[%s2005_s4 + $0x8] sm:$0xff] (%p1820_p9) }
 0x14a   : > { %1150 = vst [vmem:[%s1134_s18 + $0x8] sm:$0xff] (%p1820_p9), %v1149_v14 }
 0x14b   : > { %v1153_v16 = vld [vmem:[%s2005_s4 + $0x18] sm:$0xff] (%p1820_p9) }
 0x14c   : > { %1154 = vst [vmem:[%s1134_s18 + $0x78] sm:$0xff] (%p1820_p9), %v1153_v16 }
 0x14d   : > { %v1155_v17 = vld [vmem:[%s2005_s4 + $0x20] sm:$0xff] (%p1820_p9) }
 0x14e   : > { %1156 = vst [vmem:[%s1134_s18 + $0x80] sm:$0xff] (%p1820_p9), %v1155_v17 }
 0x15b   : > { %v1403_v60 = vpop.f32.mrf.mxu0 }
 0x15c   : > { %v1425_v61 = vpop.f32.mrf.mxu1 }
 0x15d   : > { %v1404_v63 = vpop.f32.mrf.mxu0 }
 0x15e   : > { %v1426_v0 = vpop.f32.mrf.mxu1  ;;  %v1405_v1 = vadd.f32 %v1404_v63, %v1403_v60 }
 0x15f   : > { %v1406_v2 = vpop.f32.mrf.mxu0  ;;  %v1427_v5 = vadd.f32 %v1426_v0, %v1425_v61 }
 0x160   : > { %v1428_v3 = vpop.f32.mrf.mxu1  ;;  %v1069_v4 = vadd.f32 %v1405_v1, %v412_v62 }
 0x161   : > { %v1407_v6 = vpop.f32.mrf.mxu0 }
 0x162   : > { %v1429_v7 = vpop.f32.mrf.mxu1  ;;  %v1110_v8 = vadd.f32 %v1427_v5, %v1069_v4  ;;  %v1408_v9 = vadd.f32 %v1407_v6, %v1406_v2 }
 0x163   : > { %v1430_v11 = vadd.f32 %v1429_v7, %v1428_v3 }
 0x164   : > { %1118 = vst [vmem:[%s2005_s4 + $0x10] sm:$0xff] %v1110_v8  ;;  %v1072_v10 = vadd.f32 %v1408_v9, %v412_v62  ;;  %1128 = sbr.rel (!%p1820_p9) target bundleno = 369 (0x171), region = 44 }
 0x166   : > { %v1113_v12 = vadd.f32 %v1430_v11, %v1072_v10 }
 0x168   : > { %1121 = vst [vmem:[%s2005_s4 + $0x28] sm:$0xff] %v1113_v12 }
 0x16b   : > { %v1151_v15 = vld [vmem:[%s2005_s4 + $0x10] sm:$0xff] }
 0x16c   : > { %1152 = vst [vmem:[%s1134_s18 + $0x10] sm:$0xff] %v1151_v15 }
 0x16f   : > { %v1157_v18 = vld [vmem:[%s2005_s4 + $0x28] sm:$0xff] }
 0x170   : > { %1158 = vst [vmem:[%s1134_s18 + $0x88] sm:$0xff] %v1157_v18 }
 0x171 PF: > { %s19_s17 = sadd.s32 1, %s1743_s17   ;;  %s2052_s12 = smov %s1727_s13 }
 0x172   : > { %p16_p8 = scmp.ge.s32.totalorder %s19_s17, 7   ;;  %s2053_s13 = smov %s1731_s14 }
 0x173   : > { %s2054_s14 = smov %s1818_s24  ;;  %s2055_s15 = smov %s1739_s16 }
 0x174   : > { %s2056_s16 = smov %s2058_s19  ;;  %18 = sbr.rel (!%p16_p8) target bundleno = 6 (0x6), region = 111 }
 0x179   :  { %1174 = vsyncpa [#allocation3], 1 }
 0x17a   :  { %1176 = vsyncpa [#allocation3 + $0x1], 1 }
 0x17b   :  { %1177 = vsyncpa [#allocation5], 1 }
 0x17c   :  { %1179 = vsyncpa [#allocation5 + $0x1], 1 }

// kernel: policy_head_classical.2
= control target key start
LH: loop header
LB: loop body
LE: loop exit
PB: predicated region body
PF: predicated region fallthrough
CT: control target
= control target key end

     0   :  { %8 = vsyncpa [#allocation3], 0  ;;  %s2674_s12 = smov [#allocation2]   ;;  %s3601_s0 = inlined_call_operand.vmem [shape: bf16[1024,16], index: 0, kind: input, shape index: {}]   ;;  %s3602_s1 = inlined_call_operand.vmem [shape: bf16[16,8], index: 1, kind: input, shape index: {}]   ;;  %s3603_s2 = inlined_call_operand.hbm [shape: f32[1,8], index: 2, kind: input, shape index: {}]   ;;  %s3604_s3 = inlined_call_operand.vmem [shape: bf16[1024,8], index: 3, kind: output, shape index: {}]  }
   0x1   :  { %s19_s13 = sshll.u32 %s2674_s12, 4  ;;  %s20_s13 = int_to_ptr.vmem [resolvable:$true] %s19_s13 }
   0x2   :  { %s2660_s14 = scalar_lea.vmem %s20_s13, 16  ;;  %s2664_s15 = scalar_lea.vmem %s20_s13, 32 }
   0x3   :  { %p2661_p0 = scmp.ne.s32.totalorder %s20_s13, %s2660_s14  ;;  %p2665_p1 = scmp.lt.s32.totalorder %s20_s13, %s20_s13 }
   0x4   :  { %p2666_p2 = scmp.lt.s32.totalorder %s2664_s15, %s2660_s14 }
   0x6   :  { %p2667_p3 = por %p2666_p2, %p2665_p1 }
   0x8   :  { %p2668_p4 = pnand %p2667_p3, %p2661_p0 }
   0xa   :  { %2671 = shalt.err (!%p2668_p4)
}
   0xb   :  { %22 = dma.hbm_to_vmem [thread:$0]  %s3603_s2, 16, %s20_s13, [#allocation3]  }
   0xc   :  { %2672 = dma.done.wait [#allocation3], 16  }
   0xd   :  { %2673 = vsyncadd [#allocation3], 4294967280  ;;  %v2586_v0 = vld [vmem:[%s3602_s1] sm:$0xff]   ;;  %vm490_vm0 = vcmask 130048   ;;  %v2589_v3 = vld [vmem:[%s3601_s0 + $0x8] sm:$0xff]   ;;  %vm1868_vm1 = vcmask 60416  }
   0xe   :  { %v2587_v1 = vld [vmem:[%s3601_s0] sm:$0xff]   ;;  %2453 = vmatprep.subr.bf16.mxu0 %v2586_v0  ;;  %2583 = vmatprep.subr.bf16.mxu1 %v2586_v0  ;;  %v2590_v4 = vld [vmem:[%s3601_s0 + $0x108] sm:$0xff]   ;;  %v2591_v5 = vld [vmem:[%s3601_s0 + $0x10] sm:$0xff]  }
   0xf   :  { %v2588_v2 = vld [vmem:[%s3601_s0 + $0x100] sm:$0xff]   ;;  %2454 = vmatpush3.bf16.msra.mxu0 %v2586_v0  ;;  %2584 = vmatpush3.bf16.msra.mxu1 %v2586_v0  ;;  %v2592_v6 = vld [vmem:[%s3601_s0 + $0x110] sm:$0xff]   ;;  %v2593_v7 = vld [vmem:[%s3601_s0 + $0x18] sm:$0xff]  }
  0x10   :  { %2455 = vmatprep.mubr.msk.bf16.mxu0 %vm490_vm0, %v2587_v1  ;;  %2519 = vmatprep.mubr.msk.bf16.mxu1 %vm490_vm0, %v2588_v2  ;;  %v2594_v8 = vld [vmem:[%s3601_s0 + $0x118] sm:$0xff]   ;;  %v2595_v9 = vld [vmem:[%s3601_s0 + $0x20] sm:$0xff]   ;;  %v2597_v11 = vld [vmem:[%s3601_s0 + $0x28] sm:$0xff]  }
  0x11   :  { %v2596_v10 = vld [vmem:[%s3601_s0 + $0x120] sm:$0xff]   ;;  %v2598_v12 = vld [vmem:[%s3601_s0 + $0x128] sm:$0xff]   ;;  %v2599_v13 = vld [vmem:[%s3601_s0 + $0x30] sm:$0xff]  }
  0x12   :  { %2456 = vmatmul.mubr.msk.bf16.vlgmr.msra.gmra.mxu0 %vm490_vm0, %v2589_v3  ;;  %2520 = vmatmul.mubr.msk.bf16.vlgmr.msra.gmra.mxu1 %vm490_vm0, %v2590_v4  ;;  %v2600_v14 = vld [vmem:[%s3601_s0 + $0x130] sm:$0xff]   ;;  %v2601_v15 = vld [vmem:[%s3601_s0 + $0x38] sm:$0xff]   ;;  %v2603_v17 = vld [vmem:[%s3601_s0 + $0x40] sm:$0xff]  }
  0x13   :  { %2459 = vmatprep.mubr.msk.bf16.mxu0 %vm490_vm0, %v2591_v5  ;;  %2523 = vmatprep.mubr.msk.bf16.mxu1 %vm490_vm0, %v2592_v6  ;;  %v2602_v16 = vld [vmem:[%s3601_s0 + $0x138] sm:$0xff]   ;;  %v2604_v18 = vld [vmem:[%s3601_s0 + $0x140] sm:$0xff]   ;;  %v2605_v19 = vld [vmem:[%s3601_s0 + $0x48] sm:$0xff]  }
  0x14   :  { %v2606_v20 = vld [vmem:[%s3601_s0 + $0x148] sm:$0xff]   ;;  %v2607_v21 = vld [vmem:[%s3601_s0 + $0x50] sm:$0xff]   ;;  %v2609_v23 = vld [vmem:[%s3601_s0 + $0x58] sm:$0xff]  }
  0x15   :  { %v2608_v22 = vld [vmem:[%s3601_s0 + $0x150] sm:$0xff]   ;;  %v2610_v24 = vld [vmem:[%s3601_s0 + $0x158] sm:$0xff]   ;;  %v2611_v25 = vld [vmem:[%s3601_s0 + $0x60] sm:$0xff]  }
  0x16   :  { %v2612_v26 = vld [vmem:[%s3601_s0 + $0x160] sm:$0xff]   ;;  %v2613_v27 = vld [vmem:[%s3601_s0 + $0x68] sm:$0xff]   ;;  %v2615_v29 = vld [vmem:[%s3601_s0 + $0x70] sm:$0xff]  }
  0x17   :  { %v2614_v28 = vld [vmem:[%s3601_s0 + $0x168] sm:$0xff]   ;;  %v2616_v30 = vld [vmem:[%s3601_s0 + $0x170] sm:$0xff]   ;;  %v2617_v31 = vld [vmem:[%s3601_s0 + $0x78] sm:$0xff]  }
  0x18   :  { %v2618_v32 = vld [vmem:[%s3601_s0 + $0x178] sm:$0xff]   ;;  %v2619_v33 = vld [vmem:[%s3601_s0 + $0x80] sm:$0xff]   ;;  %v2621_v35 = vld [vmem:[%s3601_s0 + $0x88] sm:$0xff]  }
  0x19   :  { %v2620_v34 = vld [vmem:[%s3601_s0 + $0x180] sm:$0xff]   ;;  %v2622_v36 = vld [vmem:[%s3601_s0 + $0x188] sm:$0xff]   ;;  %v2623_v37 = vld [vmem:[%s3601_s0 + $0x90] sm:$0xff]  }
  0x1a   :  { %2460 = vmatmul.mubr.msk.bf16.gmra.mxu0 %vm490_vm0, %v2593_v7  ;;  %2524 = vmatmul.mubr.msk.bf16.gmra.mxu1 %vm490_vm0, %v2594_v8  ;;  %v2624_v38 = vld [vmem:[%s3601_s0 + $0x190] sm:$0xff]   ;;  %v2625_v39 = vld [vmem:[%s3601_s0 + $0x98] sm:$0xff]   ;;  %v2627_v41 = vld [vmem:[%s3601_s0 + $0xa0] sm:$0xff]  }
  0x1b   :  { %2463 = vmatprep.mubr.msk.bf16.mxu0 %vm490_vm0, %v2595_v9  ;;  %2527 = vmatprep.mubr.msk.bf16.mxu1 %vm490_vm0, %v2596_v10  ;;  %v2626_v40 = vld [vmem:[%s3601_s0 + $0x198] sm:$0xff]   ;;  %v2628_v42 = vld [vmem:[%s3601_s0 + $0x1a0] sm:$0xff]   ;;  %v2629_v43 = vld [vmem:[%s3601_s0 + $0xa8] sm:$0xff]  }
  0x1c   :  { %v2630_v44 = vld [vmem:[%s3601_s0 + $0x1a8] sm:$0xff]   ;;  %v2631_v45 = vld [vmem:[%s3601_s0 + $0xb0] sm:$0xff]   ;;  %v2633_v47 = vld [vmem:[%s3601_s0 + $0xb8] sm:$0xff]  }
  0x1d   :  { %v2632_v46 = vld [vmem:[%s3601_s0 + $0x1b0] sm:$0xff]   ;;  %v2634_v48 = vld [vmem:[%s3601_s0 + $0x1b8] sm:$0xff]   ;;  %v2635_v49 = vld [vmem:[%s3601_s0 + $0xc0] sm:$0xff]  }
  0x1e   :  { %v2636_v50 = vld [vmem:[%s3601_s0 + $0x1c0] sm:$0xff]   ;;  %v2637_v51 = vld [vmem:[%s3601_s0 + $0xc8] sm:$0xff]   ;;  %v2639_v53 = vld [vmem:[%s3601_s0 + $0xd0] sm:$0xff]  }
  0x1f   :  { %v2638_v52 = vld [vmem:[%s3601_s0 + $0x1c8] sm:$0xff]   ;;  %v2640_v54 = vld [vmem:[%s3601_s0 + $0x1d0] sm:$0xff]   ;;  %v2641_v55 = vld [vmem:[%s3601_s0 + $0xd8] sm:$0xff]  }
  0x20   :  { %v2642_v56 = vld [vmem:[%s3601_s0 + $0x1d8] sm:$0xff]   ;;  %v2643_v57 = vld [vmem:[%s3601_s0 + $0xe0] sm:$0xff]   ;;  %v2645_v59 = vld [vmem:[%s3601_s0 + $0xe8] sm:$0xff]  }
  0x21   :  { %v2644_v58 = vld [vmem:[%s3601_s0 + $0x1e0] sm:$0xff]   ;;  %v2646_v60 = vld [vmem:[%s3601_s0 + $0x1e8] sm:$0xff]   ;;  %v2647_v61 = vld [vmem:[%s3601_s0 + $0xf0] sm:$0xff]  }
  0x22   :  { %2464 = vmatmul.mubr.msk.bf16.gmra.mxu0 %vm490_vm0, %v2597_v11  ;;  %2528 = vmatmul.mubr.msk.bf16.gmra.mxu1 %vm490_vm0, %v2598_v12  ;;  %v2648_v62 = vld [vmem:[%s3601_s0 + $0x1f0] sm:$0xff]   ;;  %v2649_v63 = vld [vmem:[%s3601_s0 + $0xf8] sm:$0xff]   ;;  %v2957_v1 = vld [vmem:[#allocation2] ss:$0 sm:$0xff] }
  0x23   :  { %2467 = vmatprep.mubr.msk.bf16.mxu0 %vm490_vm0, %v2599_v13  ;;  %2531 = vmatprep.mubr.msk.bf16.mxu1 %vm490_vm0, %v2600_v14  ;;  %v2650_v0 = vld [vmem:[%s3601_s0 + $0x1f8] sm:$0xff]  }
  0x2a   :  { %2468 = vmatmul.mubr.msk.bf16.gmra.mxu0 %vm490_vm0, %v2601_v15  ;;  %2532 = vmatmul.mubr.msk.bf16.gmra.mxu1 %vm490_vm0, %v2602_v16 }
  0x2b   :  { %2471 = vmatprep.mubr.msk.bf16.mxu0 %vm490_vm0, %v2603_v17  ;;  %2535 = vmatprep.mubr.msk.bf16.mxu1 %vm490_vm0, %v2604_v18 }
  0x32   :  { %2472 = vmatmul.mubr.msk.bf16.gmra.mxu0 %vm490_vm0, %v2605_v19  ;;  %2536 = vmatmul.mubr.msk.bf16.gmra.mxu1 %vm490_vm0, %v2606_v20 }
  0x33   :  { %2475 = vmatprep.mubr.msk.bf16.mxu0 %vm490_vm0, %v2607_v21  ;;  %2539 = vmatprep.mubr.msk.bf16.mxu1 %vm490_vm0, %v2608_v22 }
  0x3a   :  { %2476 = vmatmul.mubr.msk.bf16.gmra.mxu0 %vm490_vm0, %v2609_v23  ;;  %2540 = vmatmul.mubr.msk.bf16.gmra.mxu1 %vm490_vm0, %v2610_v24 }
  0x3b   :  { %2479 = vmatprep.mubr.msk.bf16.mxu0 %vm490_vm0, %v2611_v25  ;;  %2543 = vmatprep.mubr.msk.bf16.mxu1 %vm490_vm0, %v2612_v26 }
  0x42   :  { %2480 = vmatmul.mubr.msk.bf16.gmra.mxu0 %vm490_vm0, %v2613_v27  ;;  %2544 = vmatmul.mubr.msk.bf16.gmra.mxu1 %vm490_vm0, %v2614_v28 }
  0x43   :  { %2483 = vmatprep.mubr.msk.bf16.mxu0 %vm490_vm0, %v2615_v29  ;;  %2547 = vmatprep.mubr.msk.bf16.mxu1 %vm490_vm0, %v2616_v30 }
  0x4a   :  { %2484 = vmatmul.mubr.msk.bf16.gmra.mxu0 %vm490_vm0, %v2617_v31  ;;  %2548 = vmatmul.mubr.msk.bf16.gmra.mxu1 %vm490_vm0, %v2618_v32 }
  0x4b   :  { %2487 = vmatprep.mubr.msk.bf16.mxu0 %vm490_vm0, %v2619_v33  ;;  %2551 = vmatprep.mubr.msk.bf16.mxu1 %vm490_vm0, %v2620_v34 }
  0x52   :  { %2488 = vmatmul.mubr.msk.bf16.gmra.mxu0 %vm490_vm0, %v2621_v35  ;;  %2552 = vmatmul.mubr.msk.bf16.gmra.mxu1 %vm490_vm0, %v2622_v36 }
  0x53   :  { %2491 = vmatprep.mubr.msk.bf16.mxu0 %vm490_vm0, %v2623_v37  ;;  %2555 = vmatprep.mubr.msk.bf16.mxu1 %vm490_vm0, %v2624_v38 }
  0x5a   :  { %2492 = vmatmul.mubr.msk.bf16.gmra.mxu0 %vm490_vm0, %v2625_v39  ;;  %2556 = vmatmul.mubr.msk.bf16.gmra.mxu1 %vm490_vm0, %v2626_v40 }
  0x5b   :  { %2495 = vmatprep.mubr.msk.bf16.mxu0 %vm490_vm0, %v2627_v41  ;;  %2559 = vmatprep.mubr.msk.bf16.mxu1 %vm490_vm0, %v2628_v42 }
  0x62   :  { %2496 = vmatmul.mubr.msk.bf16.gmra.mxu0 %vm490_vm0, %v2629_v43  ;;  %2560 = vmatmul.mubr.msk.bf16.gmra.mxu1 %vm490_vm0, %v2630_v44 }
  0x63   :  { %2499 = vmatprep.mubr.msk.bf16.mxu0 %vm490_vm0, %v2631_v45  ;;  %2563 = vmatprep.mubr.msk.bf16.mxu1 %vm490_vm0, %v2632_v46 }
  0x6a   :  { %2500 = vmatmul.mubr.msk.bf16.gmra.mxu0 %vm490_vm0, %v2633_v47  ;;  %2564 = vmatmul.mubr.msk.bf16.gmra.mxu1 %vm490_vm0, %v2634_v48 }
  0x6b   :  { %2503 = vmatprep.mubr.msk.bf16.mxu0 %vm490_vm0, %v2635_v49  ;;  %2567 = vmatprep.mubr.msk.bf16.mxu1 %vm490_vm0, %v2636_v50 }
  0x72   :  { %2504 = vmatmul.mubr.msk.bf16.gmra.mxu0 %vm490_vm0, %v2637_v51  ;;  %2568 = vmatmul.mubr.msk.bf16.gmra.mxu1 %vm490_vm0, %v2638_v52 }
  0x73   :  { %2507 = vmatprep.mubr.msk.bf16.mxu0 %vm490_vm0, %v2639_v53  ;;  %2571 = vmatprep.mubr.msk.bf16.mxu1 %vm490_vm0, %v2640_v54 }
  0x7a   :  { %2508 = vmatmul.mubr.msk.bf16.gmra.mxu0 %vm490_vm0, %v2641_v55  ;;  %2572 = vmatmul.mubr.msk.bf16.gmra.mxu1 %vm490_vm0, %v2642_v56 }
  0x7b   :  { %2511 = vmatprep.mubr.msk.bf16.mxu0 %vm490_vm0, %v2643_v57  ;;  %2575 = vmatprep.mubr.msk.bf16.mxu1 %vm490_vm0, %v2644_v58 }
  0x82   :  { %2512 = vmatmul.mubr.msk.bf16.gmra.mxu0 %vm490_vm0, %v2645_v59  ;;  %2576 = vmatmul.mubr.msk.bf16.gmra.mxu1 %vm490_vm0, %v2646_v60 }
  0x83   :  { %2515 = vmatprep.mubr.msk.bf16.mxu0 %vm490_vm0, %v2647_v61  ;;  %2579 = vmatprep.mubr.msk.bf16.mxu1 %vm490_vm0, %v2648_v62 }
  0x8a   :  { %2516 = vmatmul.mubr.msk.bf16.gmra.mxu0 %vm490_vm0, %v2649_v63  ;;  %2580 = vmatmul.mubr.msk.bf16.gmra.mxu1 %vm490_vm0, %v2650_v0 }
  0xd2   :  { %v2457_v2 = vpop.f32.mrf.mxu0  ;;  %v2521_v3 = vpop.f32.mrf.mxu1 }
  0xd3   :  { %v726_v4 = vadd.f32 %v2457_v2, %v2957_v1  ;;  %v982_v5 = vadd.f32 %v2521_v3, %v2957_v1 }
  0xd4   :  { %v717_v6 = vpop.f32.mrf.mxu0  ;;  %v973_v7 = vpop.f32.mrf.mxu1 }
  0xd5   :  { %v1230_v8 = vmax.f32 %v726_v4, 0.0  ;;  %v1294_v9 = vmax.f32 %v982_v5, 0.0  ;;  %v718_v10 = vadd.f32 %v2957_v1, %v717_v6  ;;  %v974_v11 = vadd.f32 %v2957_v1, %v973_v7 }
  0xd6   :  { %v2458_v12 = vpop.f32.mrf.mxu0  ;;  %v2522_v13 = vpop.f32.mrf.mxu1 }
  0xd7   :  { %v2262_v14 = vpack.c.bf16 %v1230_v8, %v1230_v8  ;;  %v2326_v15 = vpack.c.bf16 %v1294_v9, %v1294_v9  ;;  %v1228_v16 = vmax.f32 %v718_v10, 0.0  ;;  %v1292_v17 = vmax.f32 %v974_v11, 0.0 }
  0xd8   :  { %v729_v18 = vadd.f32 %v2458_v12, %v2957_v1  ;;  %v985_v19 = vadd.f32 %v2522_v13, %v2957_v1  ;;  %v720_v20 = vpop.f32.mrf.mxu0  ;;  %v976_v21 = vpop.f32.mrf.mxu1 }
  0xd9   :  { %1871 = vst.msk [vmem:[%s3604_s3 + $0x8] sm:$0xf] %vm1868_vm1, %v2262_v14  ;;  %1935 = vst.msk [vmem:[%s3604_s3 + $0x108] sm:$0xf] %vm1868_vm1, %v2326_v15  ;;  %v2260_v22 = vpack.c.bf16 %v1228_v16, %v1228_v16  ;;  %v2324_v23 = vpack.c.bf16 %v1292_v17, %v1292_v17  ;;  %v721_v24 = vadd.f32 %v2957_v1, %v720_v20 }
  0xda   :  { %v977_v25 = vadd.f32 %v2957_v1, %v976_v21  ;;  %v1231_v26 = vmax.f32 %v729_v18, 0.0  ;;  %v1295_v27 = vmax.f32 %v985_v19, 0.0  ;;  %v2461_v28 = vpop.f32.mrf.mxu0  ;;  %v2525_v29 = vpop.f32.mrf.mxu1 }
  0xdb   :  { %1869 = vst.msk [vmem:[%s3604_s3] sm:$0xf] %vm1868_vm1, %v2260_v22  ;;  %1933 = vst.msk [vmem:[%s3604_s3 + $0x100] sm:$0xf] %vm1868_vm1, %v2324_v23  ;;  %v1229_v30 = vmax.f32 %v721_v24, 0.0  ;;  %v742_v32 = vadd.f32 %v2461_v28, %v2957_v1  ;;  %v998_v33 = vadd.f32 %v2525_v29, %v2957_v1 }
  0xdc   :  { %v1293_v31 = vmax.f32 %v977_v25, 0.0  ;;  %v2263_v34 = vpack.c.bf16 %v1231_v26, %v1231_v26  ;;  %v2327_v35 = vpack.c.bf16 %v1295_v27, %v1295_v27  ;;  %v733_v36 = vpop.f32.mrf.mxu0  ;;  %v989_v37 = vpop.f32.mrf.mxu1 }
  0xdd   :  { %v2261_v38 = vpack.c.bf16 %v1229_v30, %v1229_v30  ;;  %v1234_v40 = vmax.f32 %v742_v32, 0.0  ;;  %v1298_v41 = vmax.f32 %v998_v33, 0.0  ;;  %v734_v42 = vadd.f32 %v2957_v1, %v733_v36 }
  0xde   :  { %v2325_v39 = vpack.c.bf16 %v1293_v31, %v1293_v31  ;;  %1872 = vst.msk [vmem:[%s3604_s3 + $0xc] sm:$0xf] %vm1868_vm1, %v2263_v34  ;;  %1936 = vst.msk [vmem:[%s3604_s3 + $0x10c] sm:$0xf] %vm1868_vm1, %v2327_v35  ;;  %v990_v43 = vadd.f32 %v2957_v1, %v989_v37  ;;  %v2462_v44 = vpop.f32.mrf.mxu0  ;;  %v2526_v45 = vpop.f32.mrf.mxu1 }
  0xdf   :  { %1870 = vst.msk [vmem:[%s3604_s3 + $0x4] sm:$0xf] %vm1868_vm1, %v2261_v38  ;;  %v2266_v46 = vpack.c.bf16 %v1234_v40, %v1234_v40  ;;  %v2330_v47 = vpack.c.bf16 %v1298_v41, %v1298_v41  ;;  %v745_v48 = vadd.f32 %v2462_v44, %v2957_v1  ;;  %v1001_v49 = vadd.f32 %v2526_v45, %v2957_v1 }
  0xe0   :  { %1934 = vst.msk [vmem:[%s3604_s3 + $0x104] sm:$0xf] %vm1868_vm1, %v2325_v39  ;;  %v1232_v50 = vmax.f32 %v734_v42, 0.0  ;;  %v1296_v51 = vmax.f32 %v990_v43, 0.0  ;;  %v736_v52 = vpop.f32.mrf.mxu0  ;;  %v992_v53 = vpop.f32.mrf.mxu1 }
  0xe1   :  { %1875 = vst.msk [vmem:[%s3604_s3 + $0x18] sm:$0xf] %vm1868_vm1, %v2266_v46  ;;  %1939 = vst.msk [vmem:[%s3604_s3 + $0x118] sm:$0xf] %vm1868_vm1, %v2330_v47  ;;  %v1235_v54 = vmax.f32 %v745_v48, 0.0  ;;  %v1299_v55 = vmax.f32 %v1001_v49, 0.0  ;;  %v737_v56 = vadd.f32 %v2957_v1, %v736_v52  ;;  %v993_v57 = vadd.f32 %v2957_v1, %v992_v53 }
  0xe2   :  { %v2264_v58 = vpack.c.bf16 %v1232_v50, %v1232_v50  ;;  %v2328_v59 = vpack.c.bf16 %v1296_v51, %v1296_v51  ;;  %v2465_v60 = vpop.f32.mrf.mxu0  ;;  %v2529_v61 = vpop.f32.mrf.mxu1 }
  0xe3   :  { %v2267_v62 = vpack.c.bf16 %v1235_v54, %v1235_v54  ;;  %v2331_v63 = vpack.c.bf16 %v1299_v55, %v1299_v55  ;;  %v1233_v0 = vmax.f32 %v737_v56, 0.0  ;;  %v1297_v2 = vmax.f32 %v993_v57, 0.0 }
  0xe4   :  { %1873 = vst.msk [vmem:[%s3604_s3 + $0x10] sm:$0xf] %vm1868_vm1, %v2264_v58  ;;  %1937 = vst.msk [vmem:[%s3604_s3 + $0x110] sm:$0xf] %vm1868_vm1, %v2328_v59  ;;  %v758_v3 = vadd.f32 %v2465_v60, %v2957_v1  ;;  %v1014_v4 = vadd.f32 %v2529_v61, %v2957_v1  ;;  %v749_v5 = vpop.f32.mrf.mxu0  ;;  %v1005_v6 = vpop.f32.mrf.mxu1 }
  0xe5   :  { %1876 = vst.msk [vmem:[%s3604_s3 + $0x1c] sm:$0xf] %vm1868_vm1, %v2267_v62  ;;  %1940 = vst.msk [vmem:[%s3604_s3 + $0x11c] sm:$0xf] %vm1868_vm1, %v2331_v63  ;;  %v2265_v7 = vpack.c.bf16 %v1233_v0, %v1233_v0  ;;  %v2329_v8 = vpack.c.bf16 %v1297_v2, %v1297_v2  ;;  %v750_v9 = vadd.f32 %v2957_v1, %v749_v5 }
  0xe6   :  { %v1006_v10 = vadd.f32 %v2957_v1, %v1005_v6  ;;  %v1238_v11 = vmax.f32 %v758_v3, 0.0  ;;  %v1302_v12 = vmax.f32 %v1014_v4, 0.0  ;;  %v2466_v13 = vpop.f32.mrf.mxu0  ;;  %v2530_v14 = vpop.f32.mrf.mxu1 }
  0xe7   :  { %1874 = vst.msk [vmem:[%s3604_s3 + $0x14] sm:$0xf] %vm1868_vm1, %v2265_v7  ;;  %1938 = vst.msk [vmem:[%s3604_s3 + $0x114] sm:$0xf] %vm1868_vm1, %v2329_v8  ;;  %v1236_v15 = vmax.f32 %v750_v9, 0.0  ;;  %v761_v17 = vadd.f32 %v2466_v13, %v2957_v1  ;;  %v1017_v18 = vadd.f32 %v2530_v14, %v2957_v1 }
  0xe8   :  { %v1300_v16 = vmax.f32 %v1006_v10, 0.0  ;;  %v2270_v19 = vpack.c.bf16 %v1238_v11, %v1238_v11  ;;  %v2334_v20 = vpack.c.bf16 %v1302_v12, %v1302_v12  ;;  %v752_v21 = vpop.f32.mrf.mxu0  ;;  %v1008_v22 = vpop.f32.mrf.mxu1 }
  0xe9   :  { %v2268_v23 = vpack.c.bf16 %v1236_v15, %v1236_v15  ;;  %v1239_v25 = vmax.f32 %v761_v17, 0.0  ;;  %v1303_v26 = vmax.f32 %v1017_v18, 0.0  ;;  %v753_v27 = vadd.f32 %v2957_v1, %v752_v21 }
  0xea   :  { %v2332_v24 = vpack.c.bf16 %v1300_v16, %v1300_v16  ;;  %1879 = vst.msk [vmem:[%s3604_s3 + $0x28] sm:$0xf] %vm1868_vm1, %v2270_v19  ;;  %1943 = vst.msk [vmem:[%s3604_s3 + $0x128] sm:$0xf] %vm1868_vm1, %v2334_v20  ;;  %v1009_v28 = vadd.f32 %v2957_v1, %v1008_v22  ;;  %v2469_v29 = vpop.f32.mrf.mxu0  ;;  %v2533_v30 = vpop.f32.mrf.mxu1 }
  0xeb   :  { %1877 = vst.msk [vmem:[%s3604_s3 + $0x20] sm:$0xf] %vm1868_vm1, %v2268_v23  ;;  %v2271_v31 = vpack.c.bf16 %v1239_v25, %v1239_v25  ;;  %v2335_v32 = vpack.c.bf16 %v1303_v26, %v1303_v26  ;;  %v774_v33 = vadd.f32 %v2469_v29, %v2957_v1  ;;  %v1030_v34 = vadd.f32 %v2533_v30, %v2957_v1 }
  0xec   :  { %1941 = vst.msk [vmem:[%s3604_s3 + $0x120] sm:$0xf] %vm1868_vm1, %v2332_v24  ;;  %v1237_v35 = vmax.f32 %v753_v27, 0.0  ;;  %v1301_v36 = vmax.f32 %v1009_v28, 0.0  ;;  %v765_v37 = vpop.f32.mrf.mxu0  ;;  %v1021_v38 = vpop.f32.mrf.mxu1 }
  0xed   :  { %1880 = vst.msk [vmem:[%s3604_s3 + $0x2c] sm:$0xf] %vm1868_vm1, %v2271_v31  ;;  %1944 = vst.msk [vmem:[%s3604_s3 + $0x12c] sm:$0xf] %vm1868_vm1, %v2335_v32  ;;  %v1242_v39 = vmax.f32 %v774_v33, 0.0  ;;  %v1306_v40 = vmax.f32 %v1030_v34, 0.0  ;;  %v766_v41 = vadd.f32 %v2957_v1, %v765_v37  ;;  %v1022_v42 = vadd.f32 %v2957_v1, %v1021_v38 }
  0xee   :  { %v2269_v43 = vpack.c.bf16 %v1237_v35, %v1237_v35  ;;  %v2333_v44 = vpack.c.bf16 %v1301_v36, %v1301_v36  ;;  %v2470_v45 = vpop.f32.mrf.mxu0  ;;  %v2534_v46 = vpop.f32.mrf.mxu1 }
  0xef   :  { %v2274_v47 = vpack.c.bf16 %v1242_v39, %v1242_v39  ;;  %v2338_v48 = vpack.c.bf16 %v1306_v40, %v1306_v40  ;;  %v1240_v49 = vmax.f32 %v766_v41, 0.0  ;;  %v1304_v50 = vmax.f32 %v1022_v42, 0.0 }
  0xf0   :  { %1878 = vst.msk [vmem:[%s3604_s3 + $0x24] sm:$0xf] %vm1868_vm1, %v2269_v43  ;;  %1942 = vst.msk [vmem:[%s3604_s3 + $0x124] sm:$0xf] %vm1868_vm1, %v2333_v44  ;;  %v777_v51 = vadd.f32 %v2470_v45, %v2957_v1  ;;  %v1033_v52 = vadd.f32 %v2534_v46, %v2957_v1  ;;  %v768_v53 = vpop.f32.mrf.mxu0  ;;  %v1024_v54 = vpop.f32.mrf.mxu1 }
  0xf1   :  { %1883 = vst.msk [vmem:[%s3604_s3 + $0x38] sm:$0xf] %vm1868_vm1, %v2274_v47  ;;  %1947 = vst.msk [vmem:[%s3604_s3 + $0x138] sm:$0xf] %vm1868_vm1, %v2338_v48  ;;  %v2272_v55 = vpack.c.bf16 %v1240_v49, %v1240_v49  ;;  %v2336_v56 = vpack.c.bf16 %v1304_v50, %v1304_v50  ;;  %v769_v57 = vadd.f32 %v2957_v1, %v768_v53 }
  0xf2   :  { %v1025_v58 = vadd.f32 %v2957_v1, %v1024_v54  ;;  %v1243_v59 = vmax.f32 %v777_v51, 0.0  ;;  %v1307_v60 = vmax.f32 %v1033_v52, 0.0  ;;  %v2473_v61 = vpop.f32.mrf.mxu0  ;;  %v2537_v62 = vpop.f32.mrf.mxu1 }
  0xf3   :  { %1881 = vst.msk [vmem:[%s3604_s3 + $0x30] sm:$0xf] %vm1868_vm1, %v2272_v55  ;;  %1945 = vst.msk [vmem:[%s3604_s3 + $0x130] sm:$0xf] %vm1868_vm1, %v2336_v56  ;;  %v1241_v63 = vmax.f32 %v769_v57, 0.0  ;;  %v790_v2 = vadd.f32 %v2473_v61, %v2957_v1  ;;  %v1046_v3 = vadd.f32 %v2537_v62, %v2957_v1 }
  0xf4   :  { %v1305_v0 = vmax.f32 %v1025_v58, 0.0  ;;  %v2275_v4 = vpack.c.bf16 %v1243_v59, %v1243_v59  ;;  %v2339_v5 = vpack.c.bf16 %v1307_v60, %v1307_v60  ;;  %v781_v6 = vpop.f32.mrf.mxu0  ;;  %v1037_v7 = vpop.f32.mrf.mxu1 }
  0xf5   :  { %v2273_v8 = vpack.c.bf16 %v1241_v63, %v1241_v63  ;;  %v1246_v10 = vmax.f32 %v790_v2, 0.0  ;;  %v1310_v11 = vmax.f32 %v1046_v3, 0.0  ;;  %v782_v12 = vadd.f32 %v2957_v1, %v781_v6 }
  0xf6   :  { %v2337_v9 = vpack.c.bf16 %v1305_v0, %v1305_v0  ;;  %1884 = vst.msk [vmem:[%s3604_s3 + $0x3c] sm:$0xf] %vm1868_vm1, %v2275_v4  ;;  %1948 = vst.msk [vmem:[%s3604_s3 + $0x13c] sm:$0xf] %vm1868_vm1, %v2339_v5  ;;  %v1038_v13 = vadd.f32 %v2957_v1, %v1037_v7  ;;  %v2474_v14 = vpop.f32.mrf.mxu0  ;;  %v2538_v15 = vpop.f32.mrf.mxu1 }
  0xf7   :  { %1882 = vst.msk [vmem:[%s3604_s3 + $0x34] sm:$0xf] %vm1868_vm1, %v2273_v8  ;;  %v2278_v16 = vpack.c.bf16 %v1246_v10, %v1246_v10  ;;  %v2342_v17 = vpack.c.bf16 %v1310_v11, %v1310_v11  ;;  %v793_v18 = vadd.f32 %v2474_v14, %v2957_v1  ;;  %v1049_v19 = vadd.f32 %v2538_v15, %v2957_v1 }
  0xf8   :  { %1946 = vst.msk [vmem:[%s3604_s3 + $0x134] sm:$0xf] %vm1868_vm1, %v2337_v9  ;;  %v1244_v20 = vmax.f32 %v782_v12, 0.0  ;;  %v1308_v21 = vmax.f32 %v1038_v13, 0.0  ;;  %v784_v22 = vpop.f32.mrf.mxu0  ;;  %v1040_v23 = vpop.f32.mrf.mxu1 }
  0xf9   :  { %1887 = vst.msk [vmem:[%s3604_s3 + $0x48] sm:$0xf] %vm1868_vm1, %v2278_v16  ;;  %1951 = vst.msk [vmem:[%s3604_s3 + $0x148] sm:$0xf] %vm1868_vm1, %v2342_v17  ;;  %v1247_v24 = vmax.f32 %v793_v18, 0.0  ;;  %v1311_v25 = vmax.f32 %v1049_v19, 0.0  ;;  %v785_v26 = vadd.f32 %v2957_v1, %v784_v22  ;;  %v1041_v27 = vadd.f32 %v2957_v1, %v1040_v23 }
  0xfa   :  { %v2276_v28 = vpack.c.bf16 %v1244_v20, %v1244_v20  ;;  %v2340_v29 = vpack.c.bf16 %v1308_v21, %v1308_v21  ;;  %v2477_v30 = vpop.f32.mrf.mxu0  ;;  %v2541_v31 = vpop.f32.mrf.mxu1 }
  0xfb   :  { %v2279_v32 = vpack.c.bf16 %v1247_v24, %v1247_v24  ;;  %v2343_v33 = vpack.c.bf16 %v1311_v25, %v1311_v25  ;;  %v1245_v34 = vmax.f32 %v785_v26, 0.0  ;;  %v1309_v35 = vmax.f32 %v1041_v27, 0.0 }
  0xfc   :  { %1885 = vst.msk [vmem:[%s3604_s3 + $0x40] sm:$0xf] %vm1868_vm1, %v2276_v28  ;;  %1949 = vst.msk [vmem:[%s3604_s3 + $0x140] sm:$0xf] %vm1868_vm1, %v2340_v29  ;;  %v806_v36 = vadd.f32 %v2477_v30, %v2957_v1  ;;  %v1062_v37 = vadd.f32 %v2541_v31, %v2957_v1  ;;  %v797_v38 = vpop.f32.mrf.mxu0  ;;  %v1053_v39 = vpop.f32.mrf.mxu1 }
  0xfd   :  { %1888 = vst.msk [vmem:[%s3604_s3 + $0x4c] sm:$0xf] %vm1868_vm1, %v2279_v32  ;;  %1952 = vst.msk [vmem:[%s3604_s3 + $0x14c] sm:$0xf] %vm1868_vm1, %v2343_v33  ;;  %v2277_v40 = vpack.c.bf16 %v1245_v34, %v1245_v34  ;;  %v2341_v41 = vpack.c.bf16 %v1309_v35, %v1309_v35  ;;  %v798_v42 = vadd.f32 %v2957_v1, %v797_v38 }
  0xfe   :  { %v1054_v43 = vadd.f32 %v2957_v1, %v1053_v39  ;;  %v1250_v44 = vmax.f32 %v806_v36, 0.0  ;;  %v1314_v45 = vmax.f32 %v1062_v37, 0.0  ;;  %v2478_v46 = vpop.f32.mrf.mxu0  ;;  %v2542_v47 = vpop.f32.mrf.mxu1 }
  0xff   :  { %1886 = vst.msk [vmem:[%s3604_s3 + $0x44] sm:$0xf] %vm1868_vm1, %v2277_v40  ;;  %1950 = vst.msk [vmem:[%s3604_s3 + $0x144] sm:$0xf] %vm1868_vm1, %v2341_v41  ;;  %v1248_v48 = vmax.f32 %v798_v42, 0.0  ;;  %v809_v50 = vadd.f32 %v2478_v46, %v2957_v1  ;;  %v1065_v51 = vadd.f32 %v2542_v47, %v2957_v1 }
 0x100   :  { %v1312_v49 = vmax.f32 %v1054_v43, 0.0  ;;  %v2282_v52 = vpack.c.bf16 %v1250_v44, %v1250_v44  ;;  %v2346_v53 = vpack.c.bf16 %v1314_v45, %v1314_v45  ;;  %v800_v54 = vpop.f32.mrf.mxu0  ;;  %v1056_v55 = vpop.f32.mrf.mxu1 }
 0x101   :  { %v2280_v56 = vpack.c.bf16 %v1248_v48, %v1248_v48  ;;  %v1251_v58 = vmax.f32 %v809_v50, 0.0  ;;  %v1315_v59 = vmax.f32 %v1065_v51, 0.0  ;;  %v801_v60 = vadd.f32 %v2957_v1, %v800_v54 }
 0x102   :  { %v2344_v57 = vpack.c.bf16 %v1312_v49, %v1312_v49  ;;  %1891 = vst.msk [vmem:[%s3604_s3 + $0x58] sm:$0xf] %vm1868_vm1, %v2282_v52  ;;  %1955 = vst.msk [vmem:[%s3604_s3 + $0x158] sm:$0xf] %vm1868_vm1, %v2346_v53  ;;  %v1057_v61 = vadd.f32 %v2957_v1, %v1056_v55  ;;  %v2481_v62 = vpop.f32.mrf.mxu0  ;;  %v2545_v63 = vpop.f32.mrf.mxu1 }
 0x103   :  { %1889 = vst.msk [vmem:[%s3604_s3 + $0x50] sm:$0xf] %vm1868_vm1, %v2280_v56  ;;  %v2283_v0 = vpack.c.bf16 %v1251_v58, %v1251_v58  ;;  %v2347_v2 = vpack.c.bf16 %v1315_v59, %v1315_v59  ;;  %v822_v3 = vadd.f32 %v2481_v62, %v2957_v1  ;;  %v1078_v4 = vadd.f32 %v2545_v63, %v2957_v1 }
 0x104   :  { %1953 = vst.msk [vmem:[%s3604_s3 + $0x150] sm:$0xf] %vm1868_vm1, %v2344_v57  ;;  %v1249_v5 = vmax.f32 %v801_v60, 0.0  ;;  %v1313_v6 = vmax.f32 %v1057_v61, 0.0  ;;  %v813_v7 = vpop.f32.mrf.mxu0  ;;  %v1069_v8 = vpop.f32.mrf.mxu1 }
 0x105   :  { %1892 = vst.msk [vmem:[%s3604_s3 + $0x5c] sm:$0xf] %vm1868_vm1, %v2283_v0  ;;  %1956 = vst.msk [vmem:[%s3604_s3 + $0x15c] sm:$0xf] %vm1868_vm1, %v2347_v2  ;;  %v1254_v9 = vmax.f32 %v822_v3, 0.0  ;;  %v1318_v10 = vmax.f32 %v1078_v4, 0.0  ;;  %v814_v11 = vadd.f32 %v2957_v1, %v813_v7  ;;  %v1070_v12 = vadd.f32 %v2957_v1, %v1069_v8 }
 0x106   :  { %v2281_v13 = vpack.c.bf16 %v1249_v5, %v1249_v5  ;;  %v2345_v14 = vpack.c.bf16 %v1313_v6, %v1313_v6  ;;  %v2482_v15 = vpop.f32.mrf.mxu0  ;;  %v2546_v16 = vpop.f32.mrf.mxu1 }
 0x107   :  { %v2286_v17 = vpack.c.bf16 %v1254_v9, %v1254_v9  ;;  %v2350_v18 = vpack.c.bf16 %v1318_v10, %v1318_v10  ;;  %v1252_v19 = vmax.f32 %v814_v11, 0.0  ;;  %v1316_v20 = vmax.f32 %v1070_v12, 0.0 }
 0x108   :  { %1890 = vst.msk [vmem:[%s3604_s3 + $0x54] sm:$0xf] %vm1868_vm1, %v2281_v13  ;;  %1954 = vst.msk [vmem:[%s3604_s3 + $0x154] sm:$0xf] %vm1868_vm1, %v2345_v14  ;;  %v825_v21 = vadd.f32 %v2482_v15, %v2957_v1  ;;  %v1081_v22 = vadd.f32 %v2546_v16, %v2957_v1  ;;  %v816_v23 = vpop.f32.mrf.mxu0  ;;  %v1072_v24 = vpop.f32.mrf.mxu1 }
 0x109   :  { %1895 = vst.msk [vmem:[%s3604_s3 + $0x68] sm:$0xf] %vm1868_vm1, %v2286_v17  ;;  %1959 = vst.msk [vmem:[%s3604_s3 + $0x168] sm:$0xf] %vm1868_vm1, %v2350_v18  ;;  %v2284_v25 = vpack.c.bf16 %v1252_v19, %v1252_v19  ;;  %v2348_v26 = vpack.c.bf16 %v1316_v20, %v1316_v20  ;;  %v817_v27 = vadd.f32 %v2957_v1, %v816_v23 }
 0x10a   :  { %v1073_v28 = vadd.f32 %v2957_v1, %v1072_v24  ;;  %v1255_v29 = vmax.f32 %v825_v21, 0.0  ;;  %v1319_v30 = vmax.f32 %v1081_v22, 0.0  ;;  %v2485_v31 = vpop.f32.mrf.mxu0  ;;  %v2549_v32 = vpop.f32.mrf.mxu1 }
 0x10b   :  { %1893 = vst.msk [vmem:[%s3604_s3 + $0x60] sm:$0xf] %vm1868_vm1, %v2284_v25  ;;  %1957 = vst.msk [vmem:[%s3604_s3 + $0x160] sm:$0xf] %vm1868_vm1, %v2348_v26  ;;  %v1253_v33 = vmax.f32 %v817_v27, 0.0  ;;  %v838_v35 = vadd.f32 %v2485_v31, %v2957_v1  ;;  %v1094_v36 = vadd.f32 %v2549_v32, %v2957_v1 }
 0x10c   :  { %v1317_v34 = vmax.f32 %v1073_v28, 0.0  ;;  %v2287_v37 = vpack.c.bf16 %v1255_v29, %v1255_v29  ;;  %v2351_v38 = vpack.c.bf16 %v1319_v30, %v1319_v30  ;;  %v829_v39 = vpop.f32.mrf.mxu0  ;;  %v1085_v40 = vpop.f32.mrf.mxu1 }
 0x10d   :  { %v2285_v41 = vpack.c.bf16 %v1253_v33, %v1253_v33  ;;  %v1258_v43 = vmax.f32 %v838_v35, 0.0  ;;  %v1322_v44 = vmax.f32 %v1094_v36, 0.0  ;;  %v830_v45 = vadd.f32 %v2957_v1, %v829_v39 }
 0x10e   :  { %v2349_v42 = vpack.c.bf16 %v1317_v34, %v1317_v34  ;;  %1896 = vst.msk [vmem:[%s3604_s3 + $0x6c] sm:$0xf] %vm1868_vm1, %v2287_v37  ;;  %1960 = vst.msk [vmem:[%s3604_s3 + $0x16c] sm:$0xf] %vm1868_vm1, %v2351_v38  ;;  %v1086_v46 = vadd.f32 %v2957_v1, %v1085_v40  ;;  %v2486_v47 = vpop.f32.mrf.mxu0  ;;  %v2550_v48 = vpop.f32.mrf.mxu1 }
 0x10f   :  { %1894 = vst.msk [vmem:[%s3604_s3 + $0x64] sm:$0xf] %vm1868_vm1, %v2285_v41  ;;  %v2290_v49 = vpack.c.bf16 %v1258_v43, %v1258_v43  ;;  %v2354_v50 = vpack.c.bf16 %v1322_v44, %v1322_v44  ;;  %v841_v51 = vadd.f32 %v2486_v47, %v2957_v1  ;;  %v1097_v52 = vadd.f32 %v2550_v48, %v2957_v1 }
 0x110   :  { %1958 = vst.msk [vmem:[%s3604_s3 + $0x164] sm:$0xf] %vm1868_vm1, %v2349_v42  ;;  %v1256_v53 = vmax.f32 %v830_v45, 0.0  ;;  %v1320_v54 = vmax.f32 %v1086_v46, 0.0  ;;  %v832_v55 = vpop.f32.mrf.mxu0  ;;  %v1088_v56 = vpop.f32.mrf.mxu1 }
 0x111   :  { %1899 = vst.msk [vmem:[%s3604_s3 + $0x78] sm:$0xf] %vm1868_vm1, %v2290_v49  ;;  %1963 = vst.msk [vmem:[%s3604_s3 + $0x178] sm:$0xf] %vm1868_vm1, %v2354_v50  ;;  %v1259_v57 = vmax.f32 %v841_v51, 0.0  ;;  %v1323_v58 = vmax.f32 %v1097_v52, 0.0  ;;  %v833_v59 = vadd.f32 %v2957_v1, %v832_v55  ;;  %v1089_v60 = vadd.f32 %v2957_v1, %v1088_v56 }
 0x112   :  { %v2288_v61 = vpack.c.bf16 %v1256_v53, %v1256_v53  ;;  %v2352_v62 = vpack.c.bf16 %v1320_v54, %v1320_v54  ;;  %v2489_v63 = vpop.f32.mrf.mxu0  ;;  %v2553_v0 = vpop.f32.mrf.mxu1 }
 0x113   :  { %v2291_v2 = vpack.c.bf16 %v1259_v57, %v1259_v57  ;;  %v2355_v3 = vpack.c.bf16 %v1323_v58, %v1323_v58  ;;  %v1257_v4 = vmax.f32 %v833_v59, 0.0  ;;  %v1321_v5 = vmax.f32 %v1089_v60, 0.0 }
 0x114   :  { %1897 = vst.msk [vmem:[%s3604_s3 + $0x70] sm:$0xf] %vm1868_vm1, %v2288_v61  ;;  %1961 = vst.msk [vmem:[%s3604_s3 + $0x170] sm:$0xf] %vm1868_vm1, %v2352_v62  ;;  %v854_v6 = vadd.f32 %v2489_v63, %v2957_v1  ;;  %v1110_v7 = vadd.f32 %v2553_v0, %v2957_v1  ;;  %v845_v8 = vpop.f32.mrf.mxu0  ;;  %v1101_v9 = vpop.f32.mrf.mxu1 }
 0x115   :  { %1900 = vst.msk [vmem:[%s3604_s3 + $0x7c] sm:$0xf] %vm1868_vm1, %v2291_v2  ;;  %1964 = vst.msk [vmem:[%s3604_s3 + $0x17c] sm:$0xf] %vm1868_vm1, %v2355_v3  ;;  %v2289_v10 = vpack.c.bf16 %v1257_v4, %v1257_v4  ;;  %v2353_v11 = vpack.c.bf16 %v1321_v5, %v1321_v5  ;;  %v846_v12 = vadd.f32 %v2957_v1, %v845_v8 }
 0x116   :  { %v1102_v13 = vadd.f32 %v2957_v1, %v1101_v9  ;;  %v1262_v14 = vmax.f32 %v854_v6, 0.0  ;;  %v1326_v15 = vmax.f32 %v1110_v7, 0.0  ;;  %v2490_v16 = vpop.f32.mrf.mxu0  ;;  %v2554_v17 = vpop.f32.mrf.mxu1 }
 0x117   :  { %1898 = vst.msk [vmem:[%s3604_s3 + $0x74] sm:$0xf] %vm1868_vm1, %v2289_v10  ;;  %1962 = vst.msk [vmem:[%s3604_s3 + $0x174] sm:$0xf] %vm1868_vm1, %v2353_v11  ;;  %v1260_v18 = vmax.f32 %v846_v12, 0.0  ;;  %v857_v20 = vadd.f32 %v2490_v16, %v2957_v1  ;;  %v1113_v21 = vadd.f32 %v2554_v17, %v2957_v1 }
 0x118   :  { %v1324_v19 = vmax.f32 %v1102_v13, 0.0  ;;  %v2294_v22 = vpack.c.bf16 %v1262_v14, %v1262_v14  ;;  %v2358_v23 = vpack.c.bf16 %v1326_v15, %v1326_v15  ;;  %v848_v24 = vpop.f32.mrf.mxu0  ;;  %v1104_v25 = vpop.f32.mrf.mxu1 }
 0x119   :  { %v2292_v26 = vpack.c.bf16 %v1260_v18, %v1260_v18  ;;  %v1263_v28 = vmax.f32 %v857_v20, 0.0  ;;  %v1327_v29 = vmax.f32 %v1113_v21, 0.0  ;;  %v849_v30 = vadd.f32 %v2957_v1, %v848_v24 }
 0x11a   :  { %v2356_v27 = vpack.c.bf16 %v1324_v19, %v1324_v19  ;;  %1903 = vst.msk [vmem:[%s3604_s3 + $0x88] sm:$0xf] %vm1868_vm1, %v2294_v22  ;;  %1967 = vst.msk [vmem:[%s3604_s3 + $0x188] sm:$0xf] %vm1868_vm1, %v2358_v23  ;;  %v1105_v31 = vadd.f32 %v2957_v1, %v1104_v25  ;;  %v2493_v32 = vpop.f32.mrf.mxu0  ;;  %v2557_v33 = vpop.f32.mrf.mxu1 }
 0x11b   :  { %1901 = vst.msk [vmem:[%s3604_s3 + $0x80] sm:$0xf] %vm1868_vm1, %v2292_v26  ;;  %v2295_v34 = vpack.c.bf16 %v1263_v28, %v1263_v28  ;;  %v2359_v35 = vpack.c.bf16 %v1327_v29, %v1327_v29  ;;  %v870_v36 = vadd.f32 %v2493_v32, %v2957_v1  ;;  %v1126_v37 = vadd.f32 %v2557_v33, %v2957_v1 }
 0x11c   :  { %1965 = vst.msk [vmem:[%s3604_s3 + $0x180] sm:$0xf] %vm1868_vm1, %v2356_v27  ;;  %v1261_v38 = vmax.f32 %v849_v30, 0.0  ;;  %v1325_v39 = vmax.f32 %v1105_v31, 0.0  ;;  %v861_v40 = vpop.f32.mrf.mxu0  ;;  %v1117_v41 = vpop.f32.mrf.mxu1 }
 0x11d   :  { %1904 = vst.msk [vmem:[%s3604_s3 + $0x8c] sm:$0xf] %vm1868_vm1, %v2295_v34  ;;  %1968 = vst.msk [vmem:[%s3604_s3 + $0x18c] sm:$0xf] %vm1868_vm1, %v2359_v35  ;;  %v1266_v42 = vmax.f32 %v870_v36, 0.0  ;;  %v1330_v43 = vmax.f32 %v1126_v37, 0.0  ;;  %v862_v44 = vadd.f32 %v2957_v1, %v861_v40  ;;  %v1118_v45 = vadd.f32 %v2957_v1, %v1117_v41 }
 0x11e   :  { %v2293_v46 = vpack.c.bf16 %v1261_v38, %v1261_v38  ;;  %v2357_v47 = vpack.c.bf16 %v1325_v39, %v1325_v39  ;;  %v2494_v48 = vpop.f32.mrf.mxu0  ;;  %v2558_v49 = vpop.f32.mrf.mxu1 }
 0x11f   :  { %v2298_v50 = vpack.c.bf16 %v1266_v42, %v1266_v42  ;;  %v2362_v51 = vpack.c.bf16 %v1330_v43, %v1330_v43  ;;  %v1264_v52 = vmax.f32 %v862_v44, 0.0  ;;  %v1328_v53 = vmax.f32 %v1118_v45, 0.0 }
 0x120   :  { %1902 = vst.msk [vmem:[%s3604_s3 + $0x84] sm:$0xf] %vm1868_vm1, %v2293_v46  ;;  %1966 = vst.msk [vmem:[%s3604_s3 + $0x184] sm:$0xf] %vm1868_vm1, %v2357_v47  ;;  %v873_v54 = vadd.f32 %v2494_v48, %v2957_v1  ;;  %v1129_v55 = vadd.f32 %v2558_v49, %v2957_v1  ;;  %v864_v56 = vpop.f32.mrf.mxu0  ;;  %v1120_v57 = vpop.f32.mrf.mxu1 }
 0x121   :  { %1907 = vst.msk [vmem:[%s3604_s3 + $0x98] sm:$0xf] %vm1868_vm1, %v2298_v50  ;;  %1971 = vst.msk [vmem:[%s3604_s3 + $0x198] sm:$0xf] %vm1868_vm1, %v2362_v51  ;;  %v2296_v58 = vpack.c.bf16 %v1264_v52, %v1264_v52  ;;  %v2360_v59 = vpack.c.bf16 %v1328_v53, %v1328_v53  ;;  %v865_v60 = vadd.f32 %v2957_v1, %v864_v56 }
 0x122   :  { %v1121_v61 = vadd.f32 %v2957_v1, %v1120_v57  ;;  %v1267_v62 = vmax.f32 %v873_v54, 0.0  ;;  %v1331_v63 = vmax.f32 %v1129_v55, 0.0  ;;  %v2497_v0 = vpop.f32.mrf.mxu0  ;;  %v2561_v2 = vpop.f32.mrf.mxu1 }
 0x123   :  { %1905 = vst.msk [vmem:[%s3604_s3 + $0x90] sm:$0xf] %vm1868_vm1, %v2296_v58  ;;  %1969 = vst.msk [vmem:[%s3604_s3 + $0x190] sm:$0xf] %vm1868_vm1, %v2360_v59  ;;  %v1265_v3 = vmax.f32 %v865_v60, 0.0  ;;  %v886_v5 = vadd.f32 %v2497_v0, %v2957_v1  ;;  %v1142_v6 = vadd.f32 %v2561_v2, %v2957_v1 }
 0x124   :  { %v1329_v4 = vmax.f32 %v1121_v61, 0.0  ;;  %v2299_v7 = vpack.c.bf16 %v1267_v62, %v1267_v62  ;;  %v2363_v8 = vpack.c.bf16 %v1331_v63, %v1331_v63  ;;  %v877_v9 = vpop.f32.mrf.mxu0  ;;  %v1133_v10 = vpop.f32.mrf.mxu1 }
 0x125   :  { %v2297_v11 = vpack.c.bf16 %v1265_v3, %v1265_v3  ;;  %v1270_v13 = vmax.f32 %v886_v5, 0.0  ;;  %v1334_v14 = vmax.f32 %v1142_v6, 0.0  ;;  %v878_v15 = vadd.f32 %v2957_v1, %v877_v9 }
 0x126   :  { %v2361_v12 = vpack.c.bf16 %v1329_v4, %v1329_v4  ;;  %1908 = vst.msk [vmem:[%s3604_s3 + $0x9c] sm:$0xf] %vm1868_vm1, %v2299_v7  ;;  %1972 = vst.msk [vmem:[%s3604_s3 + $0x19c] sm:$0xf] %vm1868_vm1, %v2363_v8  ;;  %v1134_v16 = vadd.f32 %v2957_v1, %v1133_v10  ;;  %v2498_v17 = vpop.f32.mrf.mxu0  ;;  %v2562_v18 = vpop.f32.mrf.mxu1 }
 0x127   :  { %1906 = vst.msk [vmem:[%s3604_s3 + $0x94] sm:$0xf] %vm1868_vm1, %v2297_v11  ;;  %v2302_v19 = vpack.c.bf16 %v1270_v13, %v1270_v13  ;;  %v2366_v20 = vpack.c.bf16 %v1334_v14, %v1334_v14  ;;  %v889_v21 = vadd.f32 %v2498_v17, %v2957_v1  ;;  %v1145_v22 = vadd.f32 %v2562_v18, %v2957_v1 }
 0x128   :  { %1970 = vst.msk [vmem:[%s3604_s3 + $0x194] sm:$0xf] %vm1868_vm1, %v2361_v12  ;;  %v1268_v23 = vmax.f32 %v878_v15, 0.0  ;;  %v1332_v24 = vmax.f32 %v1134_v16, 0.0  ;;  %v880_v25 = vpop.f32.mrf.mxu0  ;;  %v1136_v26 = vpop.f32.mrf.mxu1 }
 0x129   :  { %1911 = vst.msk [vmem:[%s3604_s3 + $0xa8] sm:$0xf] %vm1868_vm1, %v2302_v19  ;;  %1975 = vst.msk [vmem:[%s3604_s3 + $0x1a8] sm:$0xf] %vm1868_vm1, %v2366_v20  ;;  %v1271_v27 = vmax.f32 %v889_v21, 0.0  ;;  %v1335_v28 = vmax.f32 %v1145_v22, 0.0  ;;  %v881_v29 = vadd.f32 %v2957_v1, %v880_v25  ;;  %v1137_v30 = vadd.f32 %v2957_v1, %v1136_v26 }
 0x12a   :  { %v2300_v31 = vpack.c.bf16 %v1268_v23, %v1268_v23  ;;  %v2364_v32 = vpack.c.bf16 %v1332_v24, %v1332_v24  ;;  %v2501_v33 = vpop.f32.mrf.mxu0  ;;  %v2565_v34 = vpop.f32.mrf.mxu1 }
 0x12b   :  { %v2303_v35 = vpack.c.bf16 %v1271_v27, %v1271_v27  ;;  %v2367_v36 = vpack.c.bf16 %v1335_v28, %v1335_v28  ;;  %v1269_v37 = vmax.f32 %v881_v29, 0.0  ;;  %v1333_v38 = vmax.f32 %v1137_v30, 0.0 }
 0x12c   :  { %1909 = vst.msk [vmem:[%s3604_s3 + $0xa0] sm:$0xf] %vm1868_vm1, %v2300_v31  ;;  %1973 = vst.msk [vmem:[%s3604_s3 + $0x1a0] sm:$0xf] %vm1868_vm1, %v2364_v32  ;;  %v902_v39 = vadd.f32 %v2501_v33, %v2957_v1  ;;  %v1158_v40 = vadd.f32 %v2565_v34, %v2957_v1  ;;  %v893_v41 = vpop.f32.mrf.mxu0  ;;  %v1149_v42 = vpop.f32.mrf.mxu1 }
 0x12d   :  { %1912 = vst.msk [vmem:[%s3604_s3 + $0xac] sm:$0xf] %vm1868_vm1, %v2303_v35  ;;  %1976 = vst.msk [vmem:[%s3604_s3 + $0x1ac] sm:$0xf] %vm1868_vm1, %v2367_v36  ;;  %v2301_v43 = vpack.c.bf16 %v1269_v37, %v1269_v37  ;;  %v2365_v44 = vpack.c.bf16 %v1333_v38, %v1333_v38  ;;  %v894_v45 = vadd.f32 %v2957_v1, %v893_v41  ;;  %v3463_v38 = vld [vmem:[#allocation2] ss:$0 sm:$0xff] }
 0x12e   :  { %v1150_v46 = vadd.f32 %v2957_v1, %v1149_v42  ;;  %v1274_v47 = vmax.f32 %v902_v39, 0.0  ;;  %v1338_v48 = vmax.f32 %v1158_v40, 0.0  ;;  %v2502_v49 = vpop.f32.mrf.mxu0  ;;  %v2566_v50 = vpop.f32.mrf.mxu1 }
 0x12f   :  { %1910 = vst.msk [vmem:[%s3604_s3 + $0xa4] sm:$0xf] %vm1868_vm1, %v2301_v43  ;;  %1974 = vst.msk [vmem:[%s3604_s3 + $0x1a4] sm:$0xf] %vm1868_vm1, %v2365_v44  ;;  %v1272_v51 = vmax.f32 %v894_v45, 0.0  ;;  %v905_v53 = vadd.f32 %v2502_v49, %v2957_v1  ;;  %v1161_v54 = vadd.f32 %v2566_v50, %v2957_v1 }
 0x130   :  { %v1336_v52 = vmax.f32 %v1150_v46, 0.0  ;;  %v2306_v55 = vpack.c.bf16 %v1274_v47, %v1274_v47  ;;  %v2370_v56 = vpack.c.bf16 %v1338_v48, %v1338_v48  ;;  %v896_v57 = vpop.f32.mrf.mxu0  ;;  %v1152_v58 = vpop.f32.mrf.mxu1 }
 0x131   :  { %v2304_v59 = vpack.c.bf16 %v1272_v51, %v1272_v51  ;;  %v1275_v61 = vmax.f32 %v905_v53, 0.0  ;;  %v1339_v62 = vmax.f32 %v1161_v54, 0.0  ;;  %v897_v63 = vadd.f32 %v2957_v1, %v896_v57 }
 0x132   :  { %v2368_v60 = vpack.c.bf16 %v1336_v52, %v1336_v52  ;;  %1915 = vst.msk [vmem:[%s3604_s3 + $0xb8] sm:$0xf] %vm1868_vm1, %v2306_v55  ;;  %1979 = vst.msk [vmem:[%s3604_s3 + $0x1b8] sm:$0xf] %vm1868_vm1, %v2370_v56  ;;  %v1153_v0 = vadd.f32 %v2957_v1, %v1152_v58  ;;  %v2505_v2 = vpop.f32.mrf.mxu0  ;;  %v2569_v3 = vpop.f32.mrf.mxu1 }
 0x133   :  { %1913 = vst.msk [vmem:[%s3604_s3 + $0xb0] sm:$0xf] %vm1868_vm1, %v2304_v59  ;;  %v2307_v4 = vpack.c.bf16 %v1275_v61, %v1275_v61  ;;  %v2371_v5 = vpack.c.bf16 %v1339_v62, %v1339_v62  ;;  %v918_v6 = vadd.f32 %v2505_v2, %v2957_v1  ;;  %v1174_v7 = vadd.f32 %v2569_v3, %v2957_v1 }
 0x134   :  { %1977 = vst.msk [vmem:[%s3604_s3 + $0x1b0] sm:$0xf] %vm1868_vm1, %v2368_v60  ;;  %v1273_v8 = vmax.f32 %v897_v63, 0.0  ;;  %v1337_v9 = vmax.f32 %v1153_v0, 0.0  ;;  %v909_v10 = vpop.f32.mrf.mxu0  ;;  %v1165_v11 = vpop.f32.mrf.mxu1 }
 0x135   :  { %1916 = vst.msk [vmem:[%s3604_s3 + $0xbc] sm:$0xf] %vm1868_vm1, %v2307_v4  ;;  %1980 = vst.msk [vmem:[%s3604_s3 + $0x1bc] sm:$0xf] %vm1868_vm1, %v2371_v5  ;;  %v1278_v12 = vmax.f32 %v918_v6, 0.0  ;;  %v1342_v13 = vmax.f32 %v1174_v7, 0.0  ;;  %v910_v14 = vadd.f32 %v2957_v1, %v909_v10  ;;  %v1166_v15 = vadd.f32 %v2957_v1, %v1165_v11 }
 0x136   :  { %v2305_v16 = vpack.c.bf16 %v1273_v8, %v1273_v8  ;;  %v2369_v17 = vpack.c.bf16 %v1337_v9, %v1337_v9  ;;  %v2506_v18 = vpop.f32.mrf.mxu0  ;;  %v2570_v19 = vpop.f32.mrf.mxu1 }
 0x137   :  { %v2310_v20 = vpack.c.bf16 %v1278_v12, %v1278_v12  ;;  %v2374_v21 = vpack.c.bf16 %v1342_v13, %v1342_v13  ;;  %v1276_v22 = vmax.f32 %v910_v14, 0.0  ;;  %v1340_v23 = vmax.f32 %v1166_v15, 0.0 }
 0x138   :  { %1914 = vst.msk [vmem:[%s3604_s3 + $0xb4] sm:$0xf] %vm1868_vm1, %v2305_v16  ;;  %1978 = vst.msk [vmem:[%s3604_s3 + $0x1b4] sm:$0xf] %vm1868_vm1, %v2369_v17  ;;  %v921_v24 = vadd.f32 %v2506_v18, %v2957_v1  ;;  %v1177_v25 = vadd.f32 %v2570_v19, %v2957_v1  ;;  %v912_v26 = vpop.f32.mrf.mxu0  ;;  %v1168_v27 = vpop.f32.mrf.mxu1 }
 0x139   :  { %1919 = vst.msk [vmem:[%s3604_s3 + $0xc8] sm:$0xf] %vm1868_vm1, %v2310_v20  ;;  %1983 = vst.msk [vmem:[%s3604_s3 + $0x1c8] sm:$0xf] %vm1868_vm1, %v2374_v21  ;;  %v2308_v28 = vpack.c.bf16 %v1276_v22, %v1276_v22  ;;  %v2372_v29 = vpack.c.bf16 %v1340_v23, %v1340_v23  ;;  %v913_v30 = vadd.f32 %v2957_v1, %v912_v26 }
 0x13a   :  { %v1169_v31 = vadd.f32 %v2957_v1, %v1168_v27  ;;  %v1279_v32 = vmax.f32 %v921_v24, 0.0  ;;  %v1343_v33 = vmax.f32 %v1177_v25, 0.0  ;;  %v2509_v34 = vpop.f32.mrf.mxu0  ;;  %v2573_v35 = vpop.f32.mrf.mxu1 }
 0x13b   :  { %1917 = vst.msk [vmem:[%s3604_s3 + $0xc0] sm:$0xf] %vm1868_vm1, %v2308_v28  ;;  %1981 = vst.msk [vmem:[%s3604_s3 + $0x1c0] sm:$0xf] %vm1868_vm1, %v2372_v29  ;;  %v1277_v36 = vmax.f32 %v913_v30, 0.0  ;;  %v934_v1 = vadd.f32 %v3463_v38, %v2509_v34  ;;  %v1190_v39 = vadd.f32 %v3463_v38, %v2573_v35 }
 0x13c   :  { %v1341_v37 = vmax.f32 %v1169_v31, 0.0  ;;  %v2311_v40 = vpack.c.bf16 %v1279_v32, %v1279_v32  ;;  %v2375_v41 = vpack.c.bf16 %v1343_v33, %v1343_v33  ;;  %v925_v42 = vpop.f32.mrf.mxu0  ;;  %v1181_v43 = vpop.f32.mrf.mxu1 }
 0x13d   :  { %v2309_v44 = vpack.c.bf16 %v1277_v36, %v1277_v36  ;;  %v1282_v46 = vmax.f32 %v934_v1, 0.0  ;;  %v1346_v47 = vmax.f32 %v1190_v39, 0.0  ;;  %v926_v48 = vadd.f32 %v3463_v38, %v925_v42 }
 0x13e   :  { %v2373_v45 = vpack.c.bf16 %v1341_v37, %v1341_v37  ;;  %1920 = vst.msk [vmem:[%s3604_s3 + $0xcc] sm:$0xf] %vm1868_vm1, %v2311_v40  ;;  %1984 = vst.msk [vmem:[%s3604_s3 + $0x1cc] sm:$0xf] %vm1868_vm1, %v2375_v41  ;;  %v1182_v49 = vadd.f32 %v3463_v38, %v1181_v43  ;;  %v2510_v50 = vpop.f32.mrf.mxu0  ;;  %v2574_v51 = vpop.f32.mrf.mxu1 }
 0x13f   :  { %1918 = vst.msk [vmem:[%s3604_s3 + $0xc4] sm:$0xf] %vm1868_vm1, %v2309_v44  ;;  %v2314_v52 = vpack.c.bf16 %v1282_v46, %v1282_v46  ;;  %v2378_v53 = vpack.c.bf16 %v1346_v47, %v1346_v47  ;;  %v937_v54 = vadd.f32 %v3463_v38, %v2510_v50  ;;  %v1193_v55 = vadd.f32 %v3463_v38, %v2574_v51 }
 0x140   :  { %1982 = vst.msk [vmem:[%s3604_s3 + $0x1c4] sm:$0xf] %vm1868_vm1, %v2373_v45  ;;  %v1280_v56 = vmax.f32 %v926_v48, 0.0  ;;  %v1344_v57 = vmax.f32 %v1182_v49, 0.0  ;;  %v928_v58 = vpop.f32.mrf.mxu0  ;;  %v1184_v59 = vpop.f32.mrf.mxu1 }
 0x141   :  { %1923 = vst.msk [vmem:[%s3604_s3 + $0xd8] sm:$0xf] %vm1868_vm1, %v2314_v52  ;;  %1987 = vst.msk [vmem:[%s3604_s3 + $0x1d8] sm:$0xf] %vm1868_vm1, %v2378_v53  ;;  %v1283_v60 = vmax.f32 %v937_v54, 0.0  ;;  %v1347_v61 = vmax.f32 %v1193_v55, 0.0  ;;  %v929_v62 = vadd.f32 %v3463_v38, %v928_v58  ;;  %v1185_v63 = vadd.f32 %v3463_v38, %v1184_v59 }
 0x142   :  { %v2312_v0 = vpack.c.bf16 %v1280_v56, %v1280_v56  ;;  %v2376_v2 = vpack.c.bf16 %v1344_v57, %v1344_v57  ;;  %v2513_v3 = vpop.f32.mrf.mxu0  ;;  %v2577_v4 = vpop.f32.mrf.mxu1 }
 0x143   :  { %v2315_v5 = vpack.c.bf16 %v1283_v60, %v1283_v60  ;;  %v2379_v6 = vpack.c.bf16 %v1347_v61, %v1347_v61  ;;  %v1281_v7 = vmax.f32 %v929_v62, 0.0  ;;  %v1345_v8 = vmax.f32 %v1185_v63, 0.0 }
 0x144   :  { %1921 = vst.msk [vmem:[%s3604_s3 + $0xd0] sm:$0xf] %vm1868_vm1, %v2312_v0  ;;  %1985 = vst.msk [vmem:[%s3604_s3 + $0x1d0] sm:$0xf] %vm1868_vm1, %v2376_v2  ;;  %v950_v9 = vadd.f32 %v3463_v38, %v2513_v3  ;;  %v1206_v10 = vadd.f32 %v3463_v38, %v2577_v4  ;;  %v941_v11 = vpop.f32.mrf.mxu0  ;;  %v1197_v12 = vpop.f32.mrf.mxu1 }
 0x145   :  { %1924 = vst.msk [vmem:[%s3604_s3 + $0xdc] sm:$0xf] %vm1868_vm1, %v2315_v5  ;;  %1988 = vst.msk [vmem:[%s3604_s3 + $0x1dc] sm:$0xf] %vm1868_vm1, %v2379_v6  ;;  %v2313_v13 = vpack.c.bf16 %v1281_v7, %v1281_v7  ;;  %v2377_v14 = vpack.c.bf16 %v1345_v8, %v1345_v8  ;;  %v942_v15 = vadd.f32 %v3463_v38, %v941_v11 }
 0x146   :  { %v1198_v16 = vadd.f32 %v3463_v38, %v1197_v12  ;;  %v1286_v17 = vmax.f32 %v950_v9, 0.0  ;;  %v1350_v18 = vmax.f32 %v1206_v10, 0.0  ;;  %v2514_v19 = vpop.f32.mrf.mxu0  ;;  %v2578_v20 = vpop.f32.mrf.mxu1 }
 0x147   :  { %1922 = vst.msk [vmem:[%s3604_s3 + $0xd4] sm:$0xf] %vm1868_vm1, %v2313_v13  ;;  %1986 = vst.msk [vmem:[%s3604_s3 + $0x1d4] sm:$0xf] %vm1868_vm1, %v2377_v14  ;;  %v1284_v21 = vmax.f32 %v942_v15, 0.0  ;;  %v953_v23 = vadd.f32 %v3463_v38, %v2514_v19  ;;  %v1209_v24 = vadd.f32 %v3463_v38, %v2578_v20 }
 0x148   :  { %v1348_v22 = vmax.f32 %v1198_v16, 0.0  ;;  %v2318_v25 = vpack.c.bf16 %v1286_v17, %v1286_v17  ;;  %v2382_v26 = vpack.c.bf16 %v1350_v18, %v1350_v18  ;;  %v944_v27 = vpop.f32.mrf.mxu0  ;;  %v1200_v28 = vpop.f32.mrf.mxu1 }
 0x149   :  { %v2316_v29 = vpack.c.bf16 %v1284_v21, %v1284_v21  ;;  %v1287_v31 = vmax.f32 %v953_v23, 0.0  ;;  %v1351_v32 = vmax.f32 %v1209_v24, 0.0  ;;  %v945_v33 = vadd.f32 %v3463_v38, %v944_v27 }
 0x14a   :  { %v2380_v30 = vpack.c.bf16 %v1348_v22, %v1348_v22  ;;  %1927 = vst.msk [vmem:[%s3604_s3 + $0xe8] sm:$0xf] %vm1868_vm1, %v2318_v25  ;;  %1991 = vst.msk [vmem:[%s3604_s3 + $0x1e8] sm:$0xf] %vm1868_vm1, %v2382_v26  ;;  %v1201_v34 = vadd.f32 %v3463_v38, %v1200_v28  ;;  %v2517_v35 = vpop.f32.mrf.mxu0  ;;  %v2581_v36 = vpop.f32.mrf.mxu1 }
 0x14b   :  { %1925 = vst.msk [vmem:[%s3604_s3 + $0xe0] sm:$0xf] %vm1868_vm1, %v2316_v29  ;;  %v2319_v37 = vpack.c.bf16 %v1287_v31, %v1287_v31  ;;  %v2383_v1 = vpack.c.bf16 %v1351_v32, %v1351_v32  ;;  %v966_v39 = vadd.f32 %v3463_v38, %v2517_v35  ;;  %v1222_v40 = vadd.f32 %v3463_v38, %v2581_v36 }
 0x14c   :  { %1989 = vst.msk [vmem:[%s3604_s3 + $0x1e0] sm:$0xf] %vm1868_vm1, %v2380_v30  ;;  %v1285_v41 = vmax.f32 %v945_v33, 0.0  ;;  %v1349_v42 = vmax.f32 %v1201_v34, 0.0  ;;  %v957_v43 = vpop.f32.mrf.mxu0  ;;  %v1213_v44 = vpop.f32.mrf.mxu1 }
 0x14d   :  { %1928 = vst.msk [vmem:[%s3604_s3 + $0xec] sm:$0xf] %vm1868_vm1, %v2319_v37  ;;  %1992 = vst.msk [vmem:[%s3604_s3 + $0x1ec] sm:$0xf] %vm1868_vm1, %v2383_v1  ;;  %v1290_v45 = vmax.f32 %v966_v39, 0.0  ;;  %v1354_v46 = vmax.f32 %v1222_v40, 0.0  ;;  %v958_v47 = vadd.f32 %v3463_v38, %v957_v43  ;;  %v1214_v48 = vadd.f32 %v3463_v38, %v1213_v44 }
 0x14e   :  { %v2317_v49 = vpack.c.bf16 %v1285_v41, %v1285_v41  ;;  %v2381_v50 = vpack.c.bf16 %v1349_v42, %v1349_v42  ;;  %v2518_v51 = vpop.f32.mrf.mxu0  ;;  %v2582_v52 = vpop.f32.mrf.mxu1 }
 0x14f   :  { %v2322_v53 = vpack.c.bf16 %v1290_v45, %v1290_v45  ;;  %v2386_v54 = vpack.c.bf16 %v1354_v46, %v1354_v46  ;;  %v1288_v55 = vmax.f32 %v958_v47, 0.0  ;;  %v1352_v56 = vmax.f32 %v1214_v48, 0.0 }
 0x150   :  { %1926 = vst.msk [vmem:[%s3604_s3 + $0xe4] sm:$0xf] %vm1868_vm1, %v2317_v49  ;;  %1990 = vst.msk [vmem:[%s3604_s3 + $0x1e4] sm:$0xf] %vm1868_vm1, %v2381_v50  ;;  %v969_v57 = vadd.f32 %v3463_v38, %v2518_v51  ;;  %v1225_v58 = vadd.f32 %v3463_v38, %v2582_v52  ;;  %v960_v59 = vpop.f32.mrf.mxu0  ;;  %v1216_v60 = vpop.f32.mrf.mxu1 }
 0x151   :  { %1931 = vst.msk [vmem:[%s3604_s3 + $0xf8] sm:$0xf] %vm1868_vm1, %v2322_v53  ;;  %1995 = vst.msk [vmem:[%s3604_s3 + $0x1f8] sm:$0xf] %vm1868_vm1, %v2386_v54  ;;  %v2320_v61 = vpack.c.bf16 %v1288_v55, %v1288_v55  ;;  %v2384_v62 = vpack.c.bf16 %v1352_v56, %v1352_v56  ;;  %v961_v63 = vadd.f32 %v3463_v38, %v960_v59 }
 0x152   :  { %v1217_v0 = vadd.f32 %v3463_v38, %v1216_v60  ;;  %v1291_v2 = vmax.f32 %v969_v57, 0.0  ;;  %v1355_v3 = vmax.f32 %v1225_v58, 0.0 }
 0x153   :  { %1929 = vst.msk [vmem:[%s3604_s3 + $0xf0] sm:$0xf] %vm1868_vm1, %v2320_v61  ;;  %1993 = vst.msk [vmem:[%s3604_s3 + $0x1f0] sm:$0xf] %vm1868_vm1, %v2384_v62  ;;  %v1289_v4 = vmax.f32 %v961_v63, 0.0 }
 0x154   :  { %v1353_v5 = vmax.f32 %v1217_v0, 0.0  ;;  %v2323_v6 = vpack.c.bf16 %v1291_v2, %v1291_v2  ;;  %v2387_v7 = vpack.c.bf16 %v1355_v3, %v1355_v3 }
 0x155   :  { %v2321_v8 = vpack.c.bf16 %v1289_v4, %v1289_v4 }
 0x156   :  { %v2385_v9 = vpack.c.bf16 %v1353_v5, %v1353_v5  ;;  %1932 = vst.msk [vmem:[%s3604_s3 + $0xfc] sm:$0xf] %vm1868_vm1, %v2323_v6  ;;  %1996 = vst.msk [vmem:[%s3604_s3 + $0x1fc] sm:$0xf] %vm1868_vm1, %v2387_v7 }
 0x157   :  { %1930 = vst.msk [vmem:[%s3604_s3 + $0xf4] sm:$0xf] %vm1868_vm1, %v2321_v8 }
 0x158   :  { %1994 = vst.msk [vmem:[%s3604_s3 + $0x1f4] sm:$0xf] %vm1868_vm1, %v2385_v9 }
 0x159   :  { %2001 = vsyncpa [#allocation3], 1 }

</bundles_post_ra>
